<compile_context>
chip_gen: v7x
topology: tpu7x:2x2x1
jax: 0.10.0
libtpu: 0.0.40
codegen_flags: <defaults>
</compile_context>

<pallas_src>
import jax
import jax.numpy as jnp
import numpy as np
from jax import lax
from jax.experimental import pallas as pl
from jax.experimental.pallas import tpu as pltpu


def _round_up(x, m):
    return (x + m - 1) // m * m


def _make_kernel(context_size, vpad, block_b, compute_dtype):
    C, Vp = context_size, vpad

    def kernel(ids_ref, t1_ref, b1_ref, w2_ref, b2_ref, out_ref):
        # ids_ref : VMEM (block_b, C)   int32          token ids for this batch tile
        # t1_ref  : VMEM (C*Vp, H)      compute_dtype  fused embedding x fc1 table
        # b1_ref  : VMEM (1, H)         f32
        # w2_ref  : VMEM (H, Vp)        compute_dtype  (padded cols are zero)
        # b2_ref  : VMEM (1, Vp)        f32            (padded lanes pre-set to -1e30)
        # out_ref : VMEM (block_b, Vp)  f32            log-probs
        ids = ids_ref[...]                                            # (block_b, C)
        vcol = lax.broadcasted_iota(jnp.int32, (block_b, Vp), 1)

        # Lane-dense one-hot, concatenated per context position:
        #   oh[b, c*Vp + v] = (ids[b, c] == v)
        oh = jnp.concatenate(
            [(vcol == ids[:, c:c + 1]).astype(compute_dtype) for c in range(C)],
            axis=-1)                                                  # (block_b, C*Vp)

        # Fused embedding gather + fc1: ONE MXU matmul, f32 accumulation.
        h = jnp.dot(oh, t1_ref[...], preferred_element_type=jnp.float32)
        h = jnp.maximum(h + b1_ref[...], 0.0)                         # bias + ReLU (f32)

        # fc2.  Padded vocab lanes get logit == b2 == -1e30 (mask baked in the
        # wrapper), so no per-step iota/compare/select is needed here.
        logits = jnp.dot(h.astype(compute_dtype), w2_ref[...],
                         preferred_element_type=jnp.float32) + b2_ref[...]

        # Numerically stable log_softmax along the vocab axis (f32).
        m = jnp.max(logits, axis=-1, keepdims=True)
        shifted = logits - m
        lse = jnp.log(jnp.sum(jnp.exp(shifted), axis=-1, keepdims=True))
        out_ref[...] = shifted - lse

    return kernel


def embedding_net_forward(inputs, emb_table, w1, b1, w2, b2, *,
                          block_b=128, compute_dtype=jnp.float32):
    """Batched EmbeddingNet forward.

    inputs: (C,) or (B, C) int32 token ids.
    Returns (B, V) float32 log-probs (B=1 for a (C,) input, matching the
    PyTorch module's (1, V) output).
    """
    if inputs.ndim == 1:
        inputs = inputs[None, :]
    B, C = inputs.shape
    V, E = emb_table.shape
    H = b1.shape[-1]
    Vp = _round_up(V, 128)                      # lane-dense logits / output
    block_b = min(block_b, _round_up(B, 8))     # avoid huge padding for tiny B
    Bp = _round_up(B, block_b)

    # --- weight folding / layout plumbing (once per call, no per-step cost) ---
    # torch fc1.weight is (H, C*E); its per-position (E, H) slice is folded
    # with the embedding table:  T[c, v, :] = emb[v] @ w1[:, c*E:(c+1)*E].T
    w1_ceh = w1.astype(jnp.float32).T.reshape(C, E, H)                # (C, E, H)
    t1 = jnp.einsum('ve,ceh->cvh', emb_table.astype(jnp.float32), w1_ceh,
                    precision=lax.Precision.HIGHEST)                  # (C, V, H)
    t1 = jnp.zeros((C, Vp, H), jnp.float32).at[:, :V, :].set(t1)
    t1 = t1.reshape(C * Vp, H).astype(compute_dtype)

    w2_r = jnp.zeros((H, Vp), compute_dtype).at[:, :V].set(w2.T.astype(compute_dtype))
    b1_r = b1.reshape(1, H).astype(jnp.float32)
    # Bake the padded-vocab mask into the bias: padded w2 columns are zero, so
    # padded logits equal exactly -1e30 and underflow to 0 in the softmax.
    b2_r = jnp.full((1, Vp), -1e30, jnp.float32).at[0, :V].set(b2.astype(jnp.float32))
    ids = jnp.zeros((Bp, C), jnp.int32).at[:B].set(inputs.astype(jnp.int32))

    # TODO(synk): for production vocab sizes, tile the Vp axis of t1/w2/b2/out
    # over a second grid axis (two-pass or online-LSE log-softmax), fall back
    # to a lane-dense fused-table row gather instead of the one-hot matmul,
    # and single-buffer the constant-index weight specs so the working set
    # stays inside v7x's 64 MiB VMEM.
    kernel = _make_kernel(C, Vp, block_b, compute_dtype)

    out = pl.pallas_call(
        kernel,
        out_shape=jax.ShapeDtypeStruct((Bp, Vp), jnp.float32),
        grid_spec=pltpu.PrefetchScalarGridSpec(
            num_scalar_prefetch=0,
            grid=(Bp // block_b,),
            in_specs=[
                pl.BlockSpec((block_b, C), lambda b: (b, 0)),      # ids tile
                # Whole-array blocks with constant index_maps: the fused table,
                # fc2 weight and biases stay VMEM-resident across batch tiles.
                pl.BlockSpec((C * Vp, H), lambda b: (0, 0)),
                pl.BlockSpec((1, H),      lambda b: (0, 0)),
                pl.BlockSpec((H, Vp),     lambda b: (0, 0)),
                pl.BlockSpec((1, Vp),     lambda b: (0, 0)),
            ],
            out_specs=pl.BlockSpec((block_b, Vp), lambda b: (b, 0)),
        ),
        compiler_params=pltpu.CompilerParams(
            # Batch tiles are independent -> both v7x TensorCores share them.
            dimension_semantics=("parallel",),
            vmem_limit_bytes=32 * 1024 * 1024),
    )(ids, t1, b1_r, w2_r, b2_r)

    return out[:B, :V]


def _reference(inputs, emb_table, w1, b1, w2, b2):
    embeds = emb_table[inputs].reshape(inputs.shape[0], -1)
    h = jnp.maximum(jnp.dot(embeds, w1.T, precision=lax.Precision.HIGHEST) + b1, 0.0)
    logits = jnp.dot(h, w2.T, precision=lax.Precision.HIGHEST) + b2
    return jax.nn.log_softmax(logits, axis=-1)


if __name__ == "__main__":
    vocab_size, embedding_dim, context_size, hidden = 50, 16, 8, 128
    batch = 256   # 2 batch tiles of 128 -> even "parallel" grid for v7x

    key = jax.random.PRNGKey(0)
    k_emb, k_w1, k_b1, k_w2, k_b2, k_in = jax.random.split(key, 6)

    emb_table = jax.random.normal(k_emb, (vocab_size, embedding_dim), jnp.float32)
    fan1 = context_size * embedding_dim
    w1 = jax.random.uniform(k_w1, (hidden, fan1), jnp.float32,
                            -1.0 / np.sqrt(fan1), 1.0 / np.sqrt(fan1))
    b1 = jax.random.uniform(k_b1, (hidden,), jnp.float32,
                            -1.0 / np.sqrt(fan1), 1.0 / np.sqrt(fan1))
    w2 = jax.random.uniform(k_w2, (vocab_size, hidden), jnp.float32,
                            -1.0 / np.sqrt(hidden), 1.0 / np.sqrt(hidden))
    b2 = jax.random.uniform(k_b2, (vocab_size,), jnp.float32,
                            -1.0 / np.sqrt(hidden), 1.0 / np.sqrt(hidden))

    inputs = jax.random.randint(k_in, (batch, context_size), 0, vocab_size,
                                dtype=jnp.int32)
    ref = _reference(inputs, emb_table, w1, b1, w2, b2)

    # Batched f32 run (exact module semantics per row).
    out = jax.block_until_ready(
        embedding_net_forward(inputs, emb_table, w1, b1, w2, b2))
    np.testing.assert_allclose(np.asarray(out), np.asarray(ref),
                               rtol=1e-5, atol=1e-5)

    # Single-context call: identical to the PyTorch module's (1, V) output.
    out1 = jax.block_until_ready(
        embedding_net_forward(inputs[0], emb_table, w1, b1, w2, b2))
    np.testing.assert_allclose(np.asarray(out1), np.asarray(ref[:1]),
                               rtol=1e-5, atol=1e-5)

    # bf16-operand run (f32 accumulation) for the bf16-native v6e/v7x MXU.
    out_bf16 = jax.block_until_ready(
        embedding_net_forward(inputs, emb_table, w1, b1, w2, b2,
                              compute_dtype=jnp.bfloat16))
    assert np.max(np.abs(np.asarray(out_bf16) - np.asarray(ref))) < 0.1

    print("KERNEL_OK")
</pallas_src>

<mosaic_0001>
module attributes {stable_mosaic.version = 11 : i64} {
  func.func @kernel(%arg0: i32, %arg1: memref<128x8xi32, #tpu.memory_space<vmem>>, %arg2: memref<1024x128xf32, #tpu.memory_space<vmem>>, %arg3: memref<1x128xf32, #tpu.memory_space<vmem>>, %arg4: memref<128x128xf32, #tpu.memory_space<vmem>>, %arg5: memref<1x128xf32, #tpu.memory_space<vmem>>, %arg6: memref<128x128xf32, #tpu.memory_space<vmem>>) attributes {dimension_semantics = [#tpu.dimension_semantics<parallel>], iteration_bounds = array<i64: 2>, scalar_prefetch = 0 : i64, scratch_operands = 0 : i64, tpu.core_type = #tpu.core_type<tc>, window_params = [{transform_indices = @transform_0, window_bounds = array<i64: 128, 8>}, {pipeline_mode = #tpu.pipeline_mode<synchronous>, transform_indices = @transform_1, window_bounds = array<i64: 1024, 128>}, {pipeline_mode = #tpu.pipeline_mode<synchronous>, transform_indices = @transform_2, window_bounds = array<i64: 1, 128>}, {pipeline_mode = #tpu.pipeline_mode<synchronous>, transform_indices = @transform_3, window_bounds = array<i64: 128, 128>}, {pipeline_mode = #tpu.pipeline_mode<synchronous>, transform_indices = @transform_4, window_bounds = array<i64: 1, 128>}, {transform_indices = @transform_5, window_bounds = array<i64: 128, 128>}]} {
    %c0 = arith.constant 0 : index
    %c0_0 = arith.constant 0 : index
    %0 = vector.load %arg1[%c0, %c0_0] : memref<128x8xi32, #tpu.memory_space<vmem>>, vector<128x8xi32>
    %1 = tpu.iota {dimensions = array<i32: 1>} : vector<128x128xi32>
    %2 = vector.extract_strided_slice %0 {offsets = [0, 0], sizes = [128, 1], strides = [1, 1]} : vector<128x8xi32> to vector<128x1xi32>
    %3 = vector.broadcast %2 : vector<128x1xi32> to vector<128x128xi32>
    %4 = arith.cmpi eq, %1, %3 : vector<128x128xi32>
    %5 = arith.extui %4 : vector<128x128xi1> to vector<128x128xi32>
    %6 = arith.sitofp %5 : vector<128x128xi32> to vector<128x128xf32>
    %7 = vector.extract_strided_slice %0 {offsets = [0, 1], sizes = [128, 1], strides = [1, 1]} : vector<128x8xi32> to vector<128x1xi32>
    %8 = vector.broadcast %7 : vector<128x1xi32> to vector<128x128xi32>
    %9 = arith.cmpi eq, %1, %8 : vector<128x128xi32>
    %10 = arith.extui %9 : vector<128x128xi1> to vector<128x128xi32>
    %11 = arith.sitofp %10 : vector<128x128xi32> to vector<128x128xf32>
    %12 = vector.extract_strided_slice %0 {offsets = [0, 2], sizes = [128, 1], strides = [1, 1]} : vector<128x8xi32> to vector<128x1xi32>
    %13 = vector.broadcast %12 : vector<128x1xi32> to vector<128x128xi32>
    %14 = arith.cmpi eq, %1, %13 : vector<128x128xi32>
    %15 = arith.extui %14 : vector<128x128xi1> to vector<128x128xi32>
    %16 = arith.sitofp %15 : vector<128x128xi32> to vector<128x128xf32>
    %17 = vector.extract_strided_slice %0 {offsets = [0, 3], sizes = [128, 1], strides = [1, 1]} : vector<128x8xi32> to vector<128x1xi32>
    %18 = vector.broadcast %17 : vector<128x1xi32> to vector<128x128xi32>
    %19 = arith.cmpi eq, %1, %18 : vector<128x128xi32>
    %20 = arith.extui %19 : vector<128x128xi1> to vector<128x128xi32>
    %21 = arith.sitofp %20 : vector<128x128xi32> to vector<128x128xf32>
    %22 = vector.extract_strided_slice %0 {offsets = [0, 4], sizes = [128, 1], strides = [1, 1]} : vector<128x8xi32> to vector<128x1xi32>
    %23 = vector.broadcast %22 : vector<128x1xi32> to vector<128x128xi32>
    %24 = arith.cmpi eq, %1, %23 : vector<128x128xi32>
    %25 = arith.extui %24 : vector<128x128xi1> to vector<128x128xi32>
    %26 = arith.sitofp %25 : vector<128x128xi32> to vector<128x128xf32>
    %27 = vector.extract_strided_slice %0 {offsets = [0, 5], sizes = [128, 1], strides = [1, 1]} : vector<128x8xi32> to vector<128x1xi32>
    %28 = vector.broadcast %27 : vector<128x1xi32> to vector<128x128xi32>
    %29 = arith.cmpi eq, %1, %28 : vector<128x128xi32>
    %30 = arith.extui %29 : vector<128x128xi1> to vector<128x128xi32>
    %31 = arith.sitofp %30 : vector<128x128xi32> to vector<128x128xf32>
    %32 = vector.extract_strided_slice %0 {offsets = [0, 6], sizes = [128, 1], strides = [1, 1]} : vector<128x8xi32> to vector<128x1xi32>
    %33 = vector.broadcast %32 : vector<128x1xi32> to vector<128x128xi32>
    %34 = arith.cmpi eq, %1, %33 : vector<128x128xi32>
    %35 = arith.extui %34 : vector<128x128xi1> to vector<128x128xi32>
    %36 = arith.sitofp %35 : vector<128x128xi32> to vector<128x128xf32>
    %37 = vector.extract_strided_slice %0 {offsets = [0, 7], sizes = [128, 1], strides = [1, 1]} : vector<128x8xi32> to vector<128x1xi32>
    %38 = vector.broadcast %37 : vector<128x1xi32> to vector<128x128xi32>
    %39 = arith.cmpi eq, %1, %38 : vector<128x128xi32>
    %40 = arith.extui %39 : vector<128x128xi1> to vector<128x128xi32>
    %41 = arith.sitofp %40 : vector<128x128xi32> to vector<128x128xf32>
    %42 = tpu.concatenate %6, %11, %16, %21, %26, %31, %36, %41 in 1 : vector<128x128xf32>, vector<128x128xf32>, vector<128x128xf32>, vector<128x128xf32>, vector<128x128xf32>, vector<128x128xf32>, vector<128x128xf32>, vector<128x128xf32> -> vector<128x1024xf32>
    %c0_1 = arith.constant 0 : index
    %c0_2 = arith.constant 0 : index
    %43 = vector.load %arg2[%c0_1, %c0_2] : memref<1024x128xf32, #tpu.memory_space<vmem>>, vector<1024x128xf32>
    %cst = arith.constant dense<0.000000e+00> : vector<128x128xf32>
    %44 = tpu.matmul %42, %43, %cst {dimension_numbers = #tpu.dot_dimension_numbers<[1], [0], [0], [1], [0, 0, 1, 1], [], []>} : vector<128x1024xf32>, vector<1024x128xf32>, vector<128x128xf32> -> vector<128x128xf32>
    %c0_3 = arith.constant 0 : index
    %c0_4 = arith.constant 0 : index
    %45 = vector.load %arg3[%c0_3, %c0_4] : memref<1x128xf32, #tpu.memory_space<vmem>>, vector<1x128xf32>
    %46 = vector.broadcast %45 : vector<1x128xf32> to vector<128x128xf32>
    %47 = arith.addf %44, %46 : vector<128x128xf32>
    %cst_5 = arith.constant 0.000000e+00 : f32
    %48 = vector.broadcast %cst_5 : f32 to vector<128x128xf32>
    %49 = arith.maximumf %47, %48 : vector<128x128xf32>
    %c0_6 = arith.constant 0 : index
    %c0_7 = arith.constant 0 : index
    %50 = vector.load %arg4[%c0_6, %c0_7] : memref<128x128xf32, #tpu.memory_space<vmem>>, vector<128x128xf32>
    %cst_8 = arith.constant dense<0.000000e+00> : vector<128x128xf32>
    %51 = tpu.matmul %49, %50, %cst_8 {dimension_numbers = #tpu.dot_dimension_numbers<[1], [0], [0], [1], [0, 0, 1, 1], [], []>} : vector<128x128xf32>, vector<128x128xf32>, vector<128x128xf32> -> vector<128x128xf32>
    %c0_9 = arith.constant 0 : index
    %c0_10 = arith.constant 0 : index
    %52 = vector.load %arg5[%c0_9, %c0_10] : memref<1x128xf32, #tpu.memory_space<vmem>>, vector<1x128xf32>
    %53 = vector.broadcast %52 : vector<1x128xf32> to vector<128x128xf32>
    %54 = arith.addf %51, %53 : vector<128x128xf32>
    %cst_11 = arith.constant dense<0xFF800000> : vector<128xf32>
    %55 = vector.multi_reduction <maximumf>, %54, %cst_11 [1] : vector<128x128xf32> to vector<128xf32>
    %56 = vector.shape_cast %55 : vector<128xf32> to vector<128x1xf32>
    %57 = vector.broadcast %56 : vector<128x1xf32> to vector<128x128xf32>
    %58 = arith.subf %54, %57 : vector<128x128xf32>
    %59 = math.exp %58 : vector<128x128xf32>
    %cst_12 = arith.constant dense<0.000000e+00> : vector<128xf32>
    %60 = vector.multi_reduction <add>, %59, %cst_12 [1] : vector<128x128xf32> to vector<128xf32>
    %61 = vector.shape_cast %60 : vector<128xf32> to vector<128x1xf32>
    %62 = math.log %61 : vector<128x1xf32>
    %63 = vector.broadcast %62 : vector<128x1xf32> to vector<128x128xf32>
    %64 = arith.subf %58, %63 : vector<128x128xf32>
    %c0_13 = arith.constant 0 : index
    %c0_14 = arith.constant 0 : index
    %65 = vector.load %arg6[%c0_13, %c0_14] : memref<128x128xf32, #tpu.memory_space<vmem>>, vector<128x128xf32>
    tpu.vector_store %arg6[%c0_13, %c0_14], %64 {strides = array<i32>} : memref<128x128xf32, #tpu.memory_space<vmem>>, vector<128x128xf32>,
    return
  }
  func.func @transform_0(%arg0: i32) -> (i32, i32) {
    %c0_i32 = arith.constant 0 : i32
    %c0_i32_0 = arith.constant 0 : i32
    return %arg0, %c0_i32 : i32, i32
  }
  func.func @transform_1(%arg0: i32) -> (i32, i32) {
    %c0_i32 = arith.constant 0 : i32
    %c0_i32_0 = arith.constant 0 : i32
    %c0_i32_1 = arith.constant 0 : i32
    return %c0_i32, %c0_i32_0 : i32, i32
  }
  func.func @transform_2(%arg0: i32) -> (i32, i32) {
    %c0_i32 = arith.constant 0 : i32
    %c0_i32_0 = arith.constant 0 : i32
    %c0_i32_1 = arith.constant 0 : i32
    return %c0_i32, %c0_i32_0 : i32, i32
  }
  func.func @transform_3(%arg0: i32) -> (i32, i32) {
    %c0_i32 = arith.constant 0 : i32
    %c0_i32_0 = arith.constant 0 : i32
    %c0_i32_1 = arith.constant 0 : i32
    return %c0_i32, %c0_i32_0 : i32, i32
  }
  func.func @transform_4(%arg0: i32) -> (i32, i32) {
    %c0_i32 = arith.constant 0 : i32
    %c0_i32_0 = arith.constant 0 : i32
    %c0_i32_1 = arith.constant 0 : i32
    return %c0_i32, %c0_i32_0 : i32, i32
  }
  func.func @transform_5(%arg0: i32) -> (i32, i32) {
    %c0_i32 = arith.constant 0 : i32
    %c0_i32_0 = arith.constant 0 : i32
    return %arg0, %c0_i32 : i32, i32
  }
}

</mosaic_0001>

<bundles_post_ra>
// kernel: tpu_custom_call.1
= control target key start
LH: loop header
LB: loop body
LE: loop exit
PB: predicated region body
PF: predicated region fallthrough
CT: control target
= control target key end

     0   :  { %10 = vsyncpa [#allocation3], 0  ;;  %s4439_s0 = inlined_call_operand.vmem [shape: s32[256,8], index: 0, kind: input, shape index: {}]   ;;  %s4440_s1 = inlined_call_operand.hbm [shape: f32[1024,128], index: 1, kind: input, shape index: {}]   ;;  %s4441_s2 = inlined_call_operand.vmem [shape: f32[1,128], index: 2, kind: input, shape index: {}]   ;;  %s4442_s3 = inlined_call_operand.vmem [shape: f32[128,128], index: 3, kind: input, shape index: {}]   ;;  %s4443_s4 = inlined_call_operand.vmem [shape: f32[1,128], index: 4, kind: input, shape index: {}]   ;;  %s4444_s5 = inlined_call_operand.hbm [shape: f32[256,128], index: 5, kind: output, shape index: {}]  }
   0x1   :  { %11 = vsyncpa [#allocation4], 0 }
   0x2   :  { %13 = vsyncpa [#allocation4 + $0x1], 0  ;;  %s3422_s18 = smov 0   ;;  %s3424_s19 = smov 0  }
   0x3   :  { %s3426_s20 = smov 0   ;;  %s3428_s21 = smov 0  }
   0x4 LB: > { %s3443_s22 = sadd.s32 4294967295, %s3375_s21   ;;  %s2190_s23 = sadd.s32 4294967294, %s3375_s21   ;;  %s3375_s21 = sphi %s3428_s21, %s4460_s21   ;;  %s3371_s20 = sphi %s3426_s20, %s4459_s20   ;;  %s3367_s19 = sphi %s3424_s19, %s4458_s19   ;;  %s3363_s18 = sphi %s3422_s18, %s4457_s18  }
   0x5   : > { %s3447_s24 = sadd.s32 1, %s3375_s21   ;;  %s136_s25 = sadd.s32 1, %s3371_s20 }
   0x6   : > { %s133_s26 = ssub.s32 %s3375_s21, %s3447_s24  ;;  %p146_p0 = scmp.ne.s32.totalorder %s3371_s20, %s3367_s19 }
   0x7   : > { %p134_p1 = scmp.eq.s32.totalorder %s133_s26, 0  ;;  %p147_p2 = scmp.eq.s32.totalorder %s3443_s22, 1 }
   0x8   : > { %p152_p3 = scmp.ne.s32.totalorder %s3367_s19, %s3363_s18  ;;  %p153_p4 = scmp.eq.s32.totalorder %s2190_s23, 1 }
   0x9   : > { %s3458_s27 = scalar_select %p134_p1, %s3371_s20, %s136_s25  }
   0xa   : > { %p3460_p5 = por %p147_p2, %p146_p0  ;;  %p3464_p6 = por %p153_p4, %p152_p3 }
   0xb   : > { %p2191_p7 = scmp.ge.s32.totalorder %s3375_s21, 1  ;;  %p160_p8 = scmp.lt.s32.totalorder %s3375_s21, 3 }
   0xc   : > { %s4448_s28 = scalar_select %p3460_p5, 1, 0 }
   0xd   : > { %s4449_s29 = scalar_select %p3464_p6, 1, 0 }
   0xe   : > { %p4445_p9 = scmp.eq.s32.totalorder %s3443_s22, 0  ;;  %p3471_p10 = pnand %p2191_p7, %p160_p8 }
   0xf   : > { %s3377_s6 = smov [#allocation2]   ;;  %s3281_s11 = scalar_lea.hbm %s4440_s1, 16384 }
  0x10   : > { %s4450_s30 = scalar_select %p3471_p10, 1, 0 }
  0x11   : > { %s172_s7 = sshll.u32 %s3377_s6, 4  ;;  %p3053_p11 = pneg %p3471_p10  ;;  %s173_s7 = int_to_ptr.vmem [resolvable:$true] %s172_s7 }
  0x12   : > { %p3282_p13 = scmp.ne.s32.totalorder %s4440_s1, %s3281_s11  ;;  %p3288_p3 = scmp.lt.u32.totalorder %s3281_s11, %s4440_s1 }
  0x13   : > { %p3479_p12 = pnand %p4445_p9, %p3053_p11 }
  0x15   : > { %p3283_p0 = pneg %p3479_p12 }
  0x17   : > { %p3284_p1 = pnand %p3283_p0, %p3282_p13 }
  0x19   : > { %p3285_p2 = pneg %p3284_p1 }
  0x1b   : > { %p3290_p4 = pnand %p3288_p3, %p3285_p2 }
  0x1d   : > { %3293 = shalt.err (!%p3290_p4)
}
  0x1e   : > { %s3294_s16 = scalar_lea.vmem %s173_s7, 16384  ;;  %p3302_p9 = scmp.lt.s32.totalorder %s173_s7, %s173_s7 }
  0x1f   : > { %p3295_p7 = scmp.ne.s32.totalorder %s173_s7, %s3294_s16  ;;  %p3303_p6 = scmp.lt.s32.totalorder %s3294_s16, %s3294_s16 }
  0x21   : > { %p3297_p8 = pnand %p3295_p7, %p3283_p0  ;;  %p3304_p5 = por %p3303_p6, %p3302_p9 }
  0x23   : > { %p3298_p11 = pneg %p3297_p8 }
  0x25   : > { %p3305_p10 = pnand %p3304_p5, %p3298_p11 }
  0x27   : > { %3308 = shalt.err (!%p3305_p10)
}
  0x28   : > { %s3378_s17 = smov 128   ;;  %s3379_s23 = smov 8  }
  0x29   : > { %3056 = dma.hbm_to_vmem [thread:$0]  (!%p3479_p12), %s4440_s1, 16384, %s173_s7, [#allocation3], %s3378_s17, %s3378_s17, %s3379_s23  }
  0x2a   : > { %p4452_p13 = scmp.ne.s32.totalorder %s4450_s30, 0 }
  0x2b   : > { %p4453_p1 = scmp.eq.s32.totalorder (!%p4452_p13), %s3443_s22, 0 }
  0x2c   : > { %206 = sbr.rel (%p4452_p13) target bundleno = 1367 (0x557), region = 40 }
  0x33   : > { %3354 = dma.done.wait (%p4453_p1), [#allocation3], 16384   ;;  %p4454_p0 = pmov %p4453_p1 }
  0x34   : > { %s2197_s6 = sshll.u32 %s3443_s22, 4  ;;  %v3380_v0 = vmov 3   ;;  %v3381_v1 = vmov 1   ;;  %v1075_v5 = vld [vmem:[#allocation2 + $0x180] sm:$0xff]  ;;  %v1076_v6 = vld [vmem:[#allocation2 + $0x188] sm:$0xff]  ;;  %v3382_v7 = vmov 2  }
  0x35   : > { %3356 = vsyncadd (%p4454_p0), [#allocation3], 4294950912  ;;  %3111 = vset.pattern.permute.xlu1 %v3380_v0  ;;  %3110 = vset.pattern.permute.xlu0 %v3381_v1  ;;  %p235_p5 = scmp.lt.s32.totalorder %s2197_s6, 31  ;;  %v2903_v8 = vpack.c.bf16 %v1076_v6, %v1075_v5  ;;  %v1059_v9 = vld [vmem:[#allocation2 + $0x100] sm:$0xff]  ;;  %v1060_v10 = vld [vmem:[#allocation2 + $0x108] sm:$0xff]  ;;  %v3383_v48 = vmov 0  }
  0x36   : > { %v1077_v11 = vld [vmem:[#allocation2 + $0x190] sm:$0xff]  ;;  %v2905_v12 = vpack.c.bf16 %v1060_v10, %v1059_v9  ;;  %v1078_v13 = vld [vmem:[#allocation2 + $0x198] sm:$0xff]  ;;  %v1079_v17 = vld [vmem:[#allocation2 + $0x1a0] sm:$0xff]  ;;  %s231_s14 = sand.u32 1, %s3367_s19   ;;  %s2462_s17 = sshll.u32 %s3443_s22, 11 }
  0x37   : > { %s4462_s6 = smov (!%p235_p5, %s2197_s6), 31  ;;  %v1061_v14 = vld [vmem:[#allocation2 + $0x110] sm:$0xff]  ;;  %v1062_v15 = vld [vmem:[#allocation2 + $0x118] sm:$0xff]  ;;  %2904 = vmatprep.subr.bf16.mxu1 %v2903_v8  ;;  %v2907_v16 = vpack.c.bf16 %v1078_v13, %v1077_v11  ;;  %v1080_v18 = vld [vmem:[#allocation2 + $0x1a8] sm:$0xff]  ;;  %s2196_s15 = sshll.u32 %s231_s14, 7 }
  0x38   : > { %s2198_s7 = sshll.u32 %s4462_s6, 3  ;;  %2906 = vmatpush3.bf16.msra.mxu1 %v2905_v12  ;;  %v2909_v20 = vpack.c.bf16 %v1062_v15, %v1061_v14  ;;  %v2911_v21 = vpack.c.bf16 %v1080_v18, %v1079_v17  ;;  %v1063_v22 = vld [vmem:[#allocation2 + $0x120] sm:$0xff]  ;;  %v1064_v23 = vld [vmem:[#allocation2 + $0x128] sm:$0xff]  ;;  %v1081_v25 = vld [vmem:[#allocation2 + $0x1b0] sm:$0xff]  ;;  %s4355_s16 = scalar_lea.vmem [#allocation5], %s2196_s15 }
  0x39   : > { %s3511_s9 = scalar_lea.vmem %s4439_s0, %s2198_s7  ;;  %2908 = vmatprep.subr.bf16.mxu1 %v2907_v16  ;;  %v1082_v26 = vld [vmem:[#allocation2 + $0x1b8] sm:$0xff]  ;;  %v2913_v27 = vpack.c.bf16 %v1064_v23, %v1063_v22  ;;  %v1065_v29 = vld [vmem:[#allocation2 + $0x130] sm:$0xff]  ;;  %v1083_v32 = vld [vmem:[#allocation2 + $0x1c0] sm:$0xff]  ;;  %s2116_s23 = sshll.u32 %s4355_s16, 4  ;;  %s4391_s23 = int_to_ptr.vmem [resolvable:$true] %s2116_s23 }
  0x3a   : > { %v3514_v2 = vld [vmem:[%s3511_s9] sm:$0xff]  ;;  %v3522_v4 = vld [vmem:[%s3511_s9 + $0x38] sm:$0xff]  ;;  %v3528_v19 = vld [vmem:[%s3511_s9 + $0x8] sm:$0xff]  ;;  %v2915_v28 = vpack.c.bf16 %v1082_v26, %v1081_v25  ;;  %s4389_s6 = scalar_lea.hbm %s4444_s5, %s2462_s17  ;;  %s4398_s22 = scalar_lea.sflag [#allocation4], %s231_s14 }
  0x3b   : > { %548 = vperm.xlu1 %3111, %v3514_v2   ;;  %356 = vperm.xlu0 %3110, %v3514_v2   ;;  %v3519_v3 = vld [vmem:[%s3511_s9 + $0x20] sm:$0xff]  ;;  %v3533_v24 = vld [vmem:[%s3511_s9 + $0x50] sm:$0xff]  ;;  %v1066_v30 = vld [vmem:[#allocation2 + $0x138] sm:$0xff]  ;;  %s3309_s7 = scalar_lea.vmem %s4391_s23, 2048  ;;  %p4455_p9 = scmp.ne.s32.totalorder %s4448_s28, 0 }
  0x3c   : > { %2910 = vmatpush3.bf16.msra.mxu1 %v2909_v20  ;;  %v3538_v31 = vld [vmem:[%s3511_s9 + $0x68] sm:$0xff]  ;;  %v2917_v34 = vpack.c.bf16 %v1066_v30, %v1065_v29  ;;  %v1067_v35 = vld [vmem:[#allocation2 + $0x140] sm:$0xff]  ;;  %v3544_v37 = vld [vmem:[%s3511_s9 + $0x10] sm:$0xff]  ;;  %p3310_p6 = scmp.ne.s32.totalorder %s4391_s23, %s3309_s7  ;;  %s3389_s8 = smov [#allocation5]  }
  0x3d   : > { %2912 = vmatprep.subr.bf16.mxu1 %v2911_v21  ;;  %v1084_v33 = vld [vmem:[#allocation2 + $0x1c8] sm:$0xff]  ;;  %v1085_v39 = vld [vmem:[#allocation2 + $0x1d0] sm:$0xff]  ;;  %v1086_v40 = vld [vmem:[#allocation2 + $0x1d8] sm:$0xff]  ;;  %s3313_s30 = sshll.u32 %s3389_s8, 4  ;;  %s3314_s30 = int_to_ptr.vmem [resolvable:$false] %s3313_s30 }
  0x3e   : > { %v1068_v36 = vld [vmem:[#allocation2 + $0x148] sm:$0xff]  ;;  %v2919_v38 = vpack.c.bf16 %v1084_v33, %v1083_v32  ;;  %v2923_v42 = vpack.c.bf16 %v1086_v40, %v1085_v39  ;;  %v1069_v43 = vld [vmem:[#allocation2 + $0x150] sm:$0xff]  ;;  %v1070_v44 = vld [vmem:[#allocation2 + $0x158] sm:$0xff]  ;;  %p3311_p10 = pnand %p3310_p6, %p4455_p9  ;;  %p3316_p2 = scmp.lt.s32.totalorder %s4391_s23, %s3314_s30 }
  0x3f   : > { %3112 = vset.pattern.permute.xlu1 %v3382_v7  ;;  %368 = vperm.xlu0 %3110, %v3519_v3   ;;  %v2921_v41 = vpack.c.bf16 %v1068_v36, %v1067_v35  ;;  %v1087_v45 = vld [vmem:[#allocation2 + $0x1e0] sm:$0xff]  ;;  %v1088_v46 = vld [vmem:[#allocation2 + $0x1e8] sm:$0xff]  ;;  %v2925_v47 = vpack.c.bf16 %v1070_v44, %v1069_v43  ;;  %v1089_v52 = vld [vmem:[#allocation2 + $0x1f0] sm:$0xff] }
  0x40   : > { %452 = vperm.xlu1 %3112, %v3514_v2   ;;  %2914 = vmatpush3.bf16.msra.mxu1 %v2913_v27  ;;  %v2927_v49 = vpack.c.bf16 %v1088_v46, %v1087_v45  ;;  %v1071_v50 = vld [vmem:[#allocation2 + $0x160] sm:$0xff]  ;;  %v1072_v51 = vld [vmem:[#allocation2 + $0x168] sm:$0xff]  ;;  %v1090_v53 = vld [vmem:[#allocation2 + $0x1f8] sm:$0xff]  ;;  %p3312_p12 = pneg %p3311_p10 }
  0x41   : > { %2916 = vmatprep.subr.bf16.mxu1 %v2915_v28  ;;  %v2929_v54 = vpack.c.bf16 %v1072_v51, %v1071_v50  ;;  %v2931_v55 = vpack.c.bf16 %v1090_v53, %v1089_v52  ;;  %v1073_v56 = vld [vmem:[#allocation2 + $0x170] sm:$0xff]  ;;  %v1074_v57 = vld [vmem:[#allocation2 + $0x178] sm:$0xff]  ;;  %v1043_v58 = vld [vmem:[#allocation2 + $0x80] sm:$0xff] }
  0x42   : > { %v1044_v59 = vld [vmem:[#allocation2 + $0x88] sm:$0xff]  ;;  %v1027_v61 = vld [vmem:[#allocation2] sm:$0xff]  ;;  %v2933_v63 = vpack.c.bf16 %v1074_v57, %v1073_v56  ;;  %v3557_v6 = vld [vmem:[%s3511_s9 + $0x18] sm:$0xff] }
  0x43   : > { %377 = vperm.xlu0 %3110, %v3522_v4   ;;  %v2871_v60 = vpack.c.bf16 %v1044_v59, %v1043_v58  ;;  %v1028_v62 = vld [vmem:[#allocation2 + $0x8] sm:$0xff]  ;;  %v1045_v8 = vld [vmem:[#allocation2 + $0x90] sm:$0xff]  ;;  %v1046_v9 = vld [vmem:[#allocation2 + $0x98] sm:$0xff] }
  0x44   : > { %3113 = vset.pattern.permute.xlu1 %v3381_v1  ;;  %2918 = vmatpush3.bf16.msra.mxu1 %v2917_v34  ;;  %v2873_v5 = vpack.c.bf16 %v1028_v62, %v1027_v61  ;;  %v2875_v10 = vpack.c.bf16 %v1046_v9, %v1045_v8  ;;  %v1029_v11 = vld [vmem:[#allocation2 + $0x10] sm:$0xff]  ;;  %v1030_v12 = vld [vmem:[#allocation2 + $0x18] sm:$0xff]  ;;  %v1047_v14 = vld [vmem:[#allocation2 + $0xa0] sm:$0xff]  ;;  %v257_v8 = vlaneseq }
  0x45   : > { %359 = vperm.xlu1 %3113, %v3528_v19   ;;  %2920 = vmatprep.subr.bf16.mxu1 %v2919_v38  ;;  %v2877_v13 = vpack.c.bf16 %v1030_v12, %v1029_v11  ;;  %v1048_v15 = vld [vmem:[#allocation2 + $0xa8] sm:$0xff]  ;;  %v1031_v17 = vld [vmem:[#allocation2 + $0x20] sm:$0xff]  ;;  %v1049_v21 = vld [vmem:[#allocation2 + $0xb0] sm:$0xff]  ;;  %v3387_v12 = vmov 1.0  }
  0x46   : > { %2872 = vmatprep.subr.bf16.mxu0 %v2871_v60  ;;  %v2879_v16 = vpack.c.bf16 %v1048_v15, %v1047_v14  ;;  %v1032_v18 = vld [vmem:[#allocation2 + $0x28] sm:$0xff]  ;;  %v1050_v22 = vld [vmem:[#allocation2 + $0xb8] sm:$0xff]  ;;  %v1033_v25 = vld [vmem:[#allocation2 + $0x30] sm:$0xff]  ;;  %v3647_v9 = vand.u32 127, %v257_v8 }
  0x47   : > { %386 = vperm.xlu0 %3110, %v3533_v24   ;;  %2874 = vmatpush3.bf16.msra.mxu0 %v2873_v5  ;;  %v2881_v20 = vpack.c.bf16 %v1032_v18, %v1031_v17  ;;  %v2883_v23 = vpack.c.bf16 %v1050_v22, %v1049_v21  ;;  %v1034_v26 = vld [vmem:[#allocation2 + $0x38] sm:$0xff]  ;;  %v3568_v27 = vld [vmem:[%s3511_s9 + $0x28] sm:$0xff]  ;;  %v1051_v29 = vld [vmem:[#allocation2 + $0xc0] sm:$0xff]  ;;  %v3385_v5 = vmov 4  }
  0x48   : > { %2922 = vmatpush3.bf16.msra.mxu1 %v2921_v41  ;;  %2876 = vmatprep.subr.bf16.mxu0 %v2875_v10  ;;  %v2885_v28 = vpack.c.bf16 %v1034_v26, %v1033_v25  ;;  %v1052_v30 = vld [vmem:[#allocation2 + $0xc8] sm:$0xff]  ;;  %v1035_v33 = vld [vmem:[#allocation2 + $0x40] sm:$0xff]  ;;  %v1053_v38 = vld [vmem:[#allocation2 + $0xd0] sm:$0xff] }
  0x49   : > { %3114 = vset.pattern.permute.xlu1 %v3380_v0  ;;  %2924 = vmatprep.subr.bf16.mxu1 %v2923_v42  ;;  %v2887_v32 = vpack.c.bf16 %v1052_v30, %v1051_v29  ;;  %v1036_v34 = vld [vmem:[#allocation2 + $0x48] sm:$0xff]  ;;  %v3574_v35 = vld [vmem:[%s3511_s9 + $0x40] sm:$0xff]  ;;  %v1054_v39 = vld [vmem:[#allocation2 + $0xd8] sm:$0xff] }
  0x4a   : > { %551 = vperm.xlu1 %3114, %v3528_v19   ;;  %v2889_v36 = vpack.c.bf16 %v1036_v34, %v1035_v33  ;;  %v2891_v40 = vpack.c.bf16 %v1054_v39, %v1053_v38  ;;  %v1037_v41 = vld [vmem:[#allocation2 + $0x50] sm:$0xff]  ;;  %v1038_v42 = vld [vmem:[#allocation2 + $0x58] sm:$0xff]  ;;  %v1055_v45 = vld [vmem:[#allocation2 + $0xe0] sm:$0xff] }
  0x4b   : > { %395 = vperm.xlu0 %3110, %v3538_v31   ;;  %2878 = vmatpush3.bf16.msra.mxu0 %v2877_v13  ;;  %v3580_v43 = vld [vmem:[%s3511_s9 + $0x58] sm:$0xff]  ;;  %v2893_v44 = vpack.c.bf16 %v1038_v42, %v1037_v41  ;;  %v1056_v46 = vld [vmem:[#allocation2 + $0xe8] sm:$0xff]  ;;  %v3586_v51 = vld [vmem:[%s3511_s9 + $0x70] sm:$0xff] }
  0x4c   : > { %2926 = vmatpush3.bf16.msra.mxu1 %v2925_v47  ;;  %2880 = vmatprep.subr.bf16.mxu0 %v2879_v16  ;;  %v2895_v47 = vpack.c.bf16 %v1056_v46, %v1055_v45  ;;  %v1040_v50 = vld [vmem:[#allocation2 + $0x68] sm:$0xff]  ;;  %v1057_v53 = vld [vmem:[#allocation2 + $0xf0] sm:$0xff]  ;;  %v1042_v57 = vld [vmem:[#allocation2 + $0x78] sm:$0xff]  ;;  %v3388_v16 = vmov 6  }
  0x4d   : > { %2928 = vmatprep.subr.bf16.mxu1 %v2927_v49  ;;  %v1039_v49 = vld [vmem:[#allocation2 + $0x60] sm:$0xff]  ;;  %v1041_v56 = vld [vmem:[#allocation2 + $0x70] sm:$0xff]  ;;  %v3606_v60 = vld [vmem:[%s3511_s9 + $0x48] sm:$0xff] }
  0x4e   : > { %3115 = vset.pattern.permute.xlu1 %v3381_v1  ;;  %v2897_v52 = vpack.c.bf16 %v1040_v50, %v1039_v49  ;;  %v2901_v58 = vpack.c.bf16 %v1042_v57, %v1041_v56  ;;  %v3600_v59 = vld [vmem:[%s3511_s9 + $0x30] sm:$0xff]  ;;  %v3612_v61 = vld [vmem:[%s3511_s9 + $0x60] sm:$0xff]  ;;  %v3617_v62 = vld [vmem:[%s3511_s9 + $0x78] sm:$0xff] }
  0x4f   : > { %362 = vperm.xlu1 %3115, %v3544_v37   ;;  %3145 = vset.pattern.permute.xlu0 %v3382_v7  ;;  %v1108_v41 = vld [vmem:[#allocation2 + $0x288] sm:$0xff]  ;;  %v1141_v57 = vld [vmem:[#allocation2 + $0x390] sm:$0xff] }
  0x50   : > { %455 = vperm.xlu0 %3145, %v3528_v19   ;;  %2930 = vmatpush3.bf16.msra.mxu1 %v2929_v54  ;;  %v1058_v54 = vld [vmem:[#allocation2 + $0xf8] sm:$0xff]  ;;  %v1140_v45 = vld [vmem:[#allocation2 + $0x388] sm:$0xff]  ;;  %v1125_v8 = vld [vmem:[#allocation2 + $0x310] sm:$0xff] }
  0x51   : > { %2932 = vmatprep.subr.bf16.mxu1 %v2931_v55  ;;  %2882 = vmatpush3.bf16.msra.mxu0 %v2881_v20  ;;  %v2899_v55 = vpack.c.bf16 %v1058_v54, %v1057_v53  ;;  %v1124_v49 = vld [vmem:[#allocation2 + $0x308] sm:$0xff]  ;;  %v1091_v53 = vld [vmem:[#allocation2 + $0x200] sm:$0xff] }
  0x52   : > { %2884 = vmatprep.subr.bf16.mxu0 %v2883_v23  ;;  %v1092_v54 = vld [vmem:[#allocation2 + $0x208] sm:$0xff] }
  0x53   : > { %3116 = vset.pattern.permute.xlu1 %v3383_v48 }
  0x54   : > { %266 = vperm.xlu1 %3116, %v3544_v37   ;;  %464 = vperm.xlu0 %3145, %v3519_v3  }
  0x55   : > { %2934 = vmatpush3.bf16.msra.mxu1 %v2933_v63  ;;  %2886 = vmatpush3.bf16.msra.mxu0 %v2885_v28  ;;  %v3384_v63 = vmov 7  }
  0x56   : > { %2888 = vmatprep.subr.bf16.mxu0 %v2887_v32 }
  0x58   : > { %3117 = vset.pattern.permute.xlu1 %v3382_v7  ;;  %473 = vperm.xlu0 %3145, %v3522_v4  }
  0x59   : > { %458 = vperm.xlu1 %3117, %v3544_v37   ;;  %2890 = vmatpush3.bf16.msra.mxu0 %v2889_v36 }
  0x5a   : > { %2892 = vmatprep.subr.bf16.mxu0 %v2891_v40  ;;  %v1107_v40 = vld [vmem:[#allocation2 + $0x280] sm:$0xff] }
  0x5b   : > { %v2935_v42 = vpack.c.bf16 %v1108_v41, %v1107_v40  ;;  %v1127_v41 = vld [vmem:[#allocation2 + $0x320] sm:$0xff] }
  0x5c   : > { %482 = vperm.xlu0 %3145, %v3533_v24  }
  0x5d   : > { %3118 = vset.pattern.permute.xlu1 %v3381_v1  ;;  %2894 = vmatpush3.bf16.msra.mxu0 %v2893_v44  ;;  %v1139_v44 = vld [vmem:[#allocation2 + $0x380] sm:$0xff] }
  0x5e   : > { %365 = vperm.xlu1 %3118, %v3557_v6   ;;  %2896 = vmatprep.subr.bf16.mxu0 %v2895_v47  ;;  %v2967_v46 = vpack.c.bf16 %v1140_v45, %v1139_v44  ;;  %v1123_v47 = vld [vmem:[#allocation2 + $0x300] sm:$0xff] }
  0x60   : > { %491 = vperm.xlu0 %3145, %v3538_v31   ;;  %2968 = vmatprep.subr.bf16.mxu1 %v2967_v46 }
  0x61   : > { %2898 = vmatpush3.bf16.msra.mxu0 %v2897_v52  ;;  %v2969_v52 = vpack.c.bf16 %v1124_v49, %v1123_v47  ;;  %v1096_v47 = vld [vmem:[#allocation2 + $0x228] sm:$0xff]  ;;  %v1113_v49 = vld [vmem:[#allocation2 + $0x2b0] sm:$0xff] }
  0x62   : > { %3119 = vset.pattern.permute.xlu1 %v3380_v0  ;;  %2900 = vmatprep.subr.bf16.mxu0 %v2899_v55  ;;  %v1109_v55 = vld [vmem:[#allocation2 + $0x290] sm:$0xff] }
  0x63   : > { %557 = vperm.xlu1 %3119, %v3557_v6  }
  0x64   : > { %3148 = vset.pattern.permute.xlu0 %v3380_v0 }
  0x65   : > { %554 = vperm.xlu0 %3148, %v3544_v37   ;;  %2902 = vmatpush3.bf16.msra.mxu0 %v2901_v58  ;;  %v1142_v58 = vld [vmem:[#allocation2 + $0x398] sm:$0xff] }
  0x66   : > { %2936 = vmatprep.subr.bf16.mxu0 %v2935_v42  ;;  %v1128_v42 = vld [vmem:[#allocation2 + $0x328] sm:$0xff] }
  0x67   : > { %3120 = vset.pattern.permute.xlu1 %v3382_v7  ;;  %v2977_v44 = vpack.c.bf16 %v1128_v42, %v1127_v41  ;;  %v1150_v41 = vld [vmem:[#allocation2 + $0x3d8] sm:$0xff]  ;;  %v1100_v42 = vld [vmem:[#allocation2 + $0x248] sm:$0xff] }
  0x68   : > { %461 = vperm.xlu1 %3120, %v3557_v6  }
  0x69   : > { %563 = vperm.xlu0 %3148, %v3568_v27  }
  0x6c   : > { %3121 = vset.pattern.permute.xlu1 %v3383_v48 }
  0x6d   : > { %272 = vperm.xlu1 %3121, %v3519_v3   ;;  %572 = vperm.xlu0 %3148, %v3574_v35  }
  0x71   : > { %3122 = vset.pattern.permute.xlu1 %v3380_v0  ;;  %581 = vperm.xlu0 %3148, %v3580_v43  }
  0x72   : > { %560 = vperm.xlu1 %3122, %v3519_v3  }
  0x75   : > { %590 = vperm.xlu0 %3148, %v3586_v51  }
  0x76   : > { %3123 = vset.pattern.permute.xlu1 %v3381_v1 }
  0x77   : > { %371 = vperm.xlu1 %3123, %v3568_v27  }
  0x79   : > { %3151 = vset.pattern.permute.xlu0 %v3383_v48 }
  0x7a   : > { %260 = vperm.xlu0 %3151, %v3514_v2  }
  0x7b   : > { %3124 = vset.pattern.permute.xlu1 %v3383_v48 }
  0x7c   : > { %275 = vperm.xlu1 %3124, %v3568_v27  }
  0x7e   : > { %263 = vperm.xlu0 %3151, %v3528_v19  }
  0x80   : > { %3125 = vset.pattern.permute.xlu1 %v3382_v7 }
  0x81   : > { %467 = vperm.xlu1 %3125, %v3568_v27  }
  0x82   : > { %269 = vperm.xlu0 %3151, %v3557_v6  }
  0x85   : > { %3126 = vset.pattern.permute.xlu1 %v3381_v1 }
  0x86   : > { %374 = vperm.xlu1 %3126, %v3600_v59   ;;  %278 = vperm.xlu0 %3151, %v3600_v59  }
  0x8a   : > { %3127 = vset.pattern.permute.xlu1 %v3380_v0  ;;  %287 = vperm.xlu0 %3151, %v3606_v60  }
  0x8b   : > { %566 = vperm.xlu1 %3127, %v3600_v59  }
  0x8e   : > { %296 = vperm.xlu0 %3151, %v3612_v61  }
  0x8f   : > { %3128 = vset.pattern.permute.xlu1 %v3382_v7 }
  0x90   : > { %470 = vperm.xlu1 %3128, %v3600_v59  }
  0x92   : > { %305 = vperm.xlu0 %3151, %v3617_v62  }
  0x94   : > { %3129 = vset.pattern.permute.xlu1 %v3383_v48 }
  0x95   : > { %281 = vperm.xlu1 %3129, %v3522_v4  }
  0x96   : > { %3160 = vset.pattern.permute.xlu0 %v3384_v63 }
  0x97   : > { %935 = vperm.xlu0 %3160, %v3528_v19  }
  0x99   : > { %3130 = vset.pattern.permute.xlu1 %v3380_v0 }
  0x9a   : > { %569 = vperm.xlu1 %3130, %v3522_v4  }
  0x9b   : > { %944 = vperm.xlu0 %3160, %v3519_v3   ;;  %v3386_v3 = vmov 5  }
  0x9e   : > { %3131 = vset.pattern.permute.xlu1 %v3381_v1 }
  0x9f   : > { %380 = vperm.xlu1 %3131, %v3574_v35   ;;  %3169 = vset.pattern.permute.xlu0 %v3385_v5 }
  0xa0   : > { %650 = vperm.xlu0 %3169, %v3544_v37  }
  0xa3   : > { %3132 = vset.pattern.permute.xlu1 %v3383_v48 }
  0xa4   : > { %284 = vperm.xlu1 %3132, %v3574_v35   ;;  %659 = vperm.xlu0 %3169, %v3568_v27  }
  0xa8   : > { %3133 = vset.pattern.permute.xlu1 %v3382_v7  ;;  %668 = vperm.xlu0 %3169, %v3574_v35  }
  0xa9   : > { %476 = vperm.xlu1 %3133, %v3574_v35  }
  0xac   : > { %3180 = vset.pattern.permute.xlu0 %v3386_v3 }
  0xad   : > { %3134 = vset.pattern.permute.xlu1 %v3381_v1  ;;  %740 = vperm.xlu0 %3180, %v3514_v2  }
  0xae   : > { %383 = vperm.xlu1 %3134, %v3606_v60  }
  0xb1   : > { %749 = vperm.xlu0 %3180, %v3557_v6  }
  0xb2   : > { %3135 = vset.pattern.permute.xlu1 %v3380_v0 }
  0xb3   : > { %575 = vperm.xlu1 %3135, %v3606_v60  }
  0xb5   : > { %758 = vperm.xlu0 %3180, %v3600_v59  }
  0xb7   : > { %3136 = vset.pattern.permute.xlu1 %v3382_v7 }
  0xb8   : > { %479 = vperm.xlu1 %3136, %v3606_v60  }
  0xb9   : > { %767 = vperm.xlu0 %3180, %v3606_v60  }
  0xba   : > { %v549_v10 = vpop.permute.xlu1 %548  ;;  %v357_v11 = vpop.permute.xlu0 %356 }
  0xbb   : > { %vm595_vm0 = vcmp.eq.s32.totalorder %v3647_v9, %v549_v10  ;;  %vm403_vm1 = vcmp.eq.s32.totalorder %v3647_v9, %v357_v11  ;;  %v1126_v10 = vld [vmem:[#allocation2 + $0x318] sm:$0xff]  ;;  %v2937_v11 = vpack.c.bf16 %v1092_v54, %v1091_v53  ;;  %v1145_v53 = vld [vmem:[#allocation2 + $0x3b0] sm:$0xff] }
  0xbc   : > { %3137 = vset.pattern.permute.xlu1 %v3383_v48  ;;  %2360 = vmatprep.mubr.msk.f32.mxu1 %vm595_vm0, %v3387_v12  ;;  %v1146_v54 = vld [vmem:[#allocation2 + $0x3b8] sm:$0xff] }
  0xbd   : > { %290 = vperm.xlu1 %3137, %v3533_v24   ;;  %2328 = vmatprep.mubr.msk.f32.mxu0 %vm403_vm1, %v3387_v12 }
  0xbe   : > { %v3657_v13 = vpop.permute.xlu0 %368  ;;  %776 = vperm.xlu0 %3180, %v3612_v61  }
  0xbf   : > { %v453_v14 = vpop.permute.xlu1 %452 }
  0xc0   : > { %vm499_vm2 = vcmp.eq.s32.totalorder %v3647_v9, %v453_v14  ;;  %v2973_v14 = vpack.c.bf16 %v1126_v10, %v1125_v8  ;;  %v1097_v10 = vld [vmem:[#allocation2 + $0x230] sm:$0xff] }
  0xc1   : > { %3138 = vset.pattern.permute.xlu1 %v3380_v0  ;;  %2361 = vmatmul.mubr.msk.f32.vlgmr.msra.gmra.mrb[0].mxu1 %vm499_vm2, %v3387_v12 }
  0xc2   : > { %578 = vperm.xlu1 %3138, %v3533_v24   ;;  %v3664_v15 = vpop.permute.xlu0 %377  ;;  %3191 = vset.pattern.permute.xlu0 %v3388_v16 }
  0xc3   : > { %836 = vperm.xlu0 %3191, %v3514_v2   ;;  %2970 = vmatpush3.bf16.msra.mxu1 %v2969_v52  ;;  %v1114_v52 = vld [vmem:[#allocation2 + $0x2b8] sm:$0xff] }
  0xc4   : > { %v3668_v17 = vpop.permute.xlu1 %359  ;;  %v2947_v8 = vpack.c.bf16 %v1114_v52, %v1113_v49  ;;  %v1151_v52 = vld [vmem:[#allocation2 + $0x3e0] sm:$0xff] }
  0xc5   : > { %vm404_vm13 = vcmp.eq.s32.totalorder %v3647_v9, %v3668_v17  ;;  %v1095_v17 = vld [vmem:[#allocation2 + $0x220] sm:$0xff] }
  0xc6   : > { %3139 = vset.pattern.permute.xlu1 %v3381_v1  ;;  %v3671_v18 = vpop.permute.xlu0 %386 }
  0xc7   : > { %389 = vperm.xlu1 %3139, %v3580_v43   ;;  %845 = vperm.xlu0 %3191, %v3557_v6  }
  0xc9   : > { %v552_v20 = vpop.permute.xlu1 %551 }
  0xca   : > { %vm596_vm3 = vcmp.eq.s32.totalorder %v3647_v9, %v552_v20  ;;  %v3676_v21 = vpop.permute.xlu0 %395 }
  0xcb   : > { %3140 = vset.pattern.permute.xlu1 %v3383_v48  ;;  %2362 = vmatprep.mubr.msk.f32.mxu1 %vm596_vm3, %v3387_v12 }
  0xcc   : > { %293 = vperm.xlu1 %3140, %v3580_v43   ;;  %854 = vperm.xlu0 %3191, %v3600_v59  }
  0xce   : > { %v3682_v22 = vpop.permute.xlu1 %362 }
  0xcf   : > { %v456_v23 = vpop.permute.xlu0 %455  ;;  %vm405_vm15 = vcmp.eq.s32.totalorder %v3647_v9, %v3682_v22 }
  0xd0   : > { %3141 = vset.pattern.permute.xlu1 %v3382_v7  ;;  %vm500_vm4 = vcmp.eq.s32.totalorder %v3647_v9, %v456_v23  ;;  %863 = vperm.xlu0 %3191, %v3606_v60  }
  0xd1   : > { %485 = vperm.xlu1 %3141, %v3580_v43   ;;  %2363 = vmatmul.mubr.msk.f32.gmra.mrb[2].mxu1 %vm500_vm4, %v3387_v12  ;;  %vm407_vm4 = vcmp.eq.s32.totalorder %v3647_v9, %v3657_v13  ;;  %v1101_v13 = vld [vmem:[#allocation2 + $0x250] sm:$0xff] }
  0xd3   : > { %v3689_v25 = vpop.permute.xlu1 %266  ;;  %v465_v26 = vpop.permute.xlu0 %464 }
  0xd4   : > { %872 = vperm.xlu0 %3191, %v3612_v61   ;;  %vm503_vm9 = vcmp.eq.s32.totalorder %v3647_v9, %v465_v26  ;;  %v1093_v26 = vld [vmem:[#allocation2 + $0x210] sm:$0xff]  ;;  %vm309_vm1 = vcmp.eq.s32.totalorder %v3647_v9, %v3689_v25 }
  0xd5   : > { %3142 = vset.pattern.permute.xlu1 %v3381_v1 }
  0xd6   : > { %392 = vperm.xlu1 %3142, %v3612_v61  }
  0xd7   : > { %v3694_v28 = vpop.permute.xlu0 %473 }
  0xd8   : > { %v459_v29 = vpop.permute.xlu1 %458  ;;  %3194 = vset.pattern.permute.xlu0 %v3384_v63 }
  0xd9   : > { %953 = vperm.xlu0 %3194, %v3522_v4   ;;  %vm501_vm6 = vcmp.eq.s32.totalorder %v3647_v9, %v459_v29  ;;  %v1094_v29 = vld [vmem:[#allocation2 + $0x218] sm:$0xff] }
  0xda   : > { %3143 = vset.pattern.permute.xlu1 %v3380_v0 }
  0xdb   : > { %584 = vperm.xlu1 %3143, %v3612_v61   ;;  %v3700_v30 = vpop.permute.xlu0 %482 }
  0xdd   : > { %v3702_v32 = vpop.permute.xlu1 %365  ;;  %962 = vperm.xlu0 %3194, %v3533_v24  }
  0xde   : > { %vm406_vm2 = vcmp.eq.s32.totalorder %v3647_v9, %v3702_v32 }
  0xdf   : > { %3144 = vset.pattern.permute.xlu1 %v3382_v7  ;;  %v3706_v33 = vpop.permute.xlu0 %491 }
  0xe0   : > { %488 = vperm.xlu1 %3144, %v3612_v61   ;;  %v2971_v61 = vpack.c.bf16 %v1142_v58, %v1141_v57  ;;  %v2945_v58 = vpack.c.bf16 %v1096_v47, %v1095_v17  ;;  %v1118_v17 = vld [vmem:[#allocation2 + $0x2d8] sm:$0xff] }
  0xe1   : > { %971 = vperm.xlu0 %3194, %v3538_v31  }
  0xe2   : > { %v558_v34 = vpop.permute.xlu1 %557  ;;  %2972 = vmatprep.subr.bf16.mxu1 %v2971_v61 }
  0xe3   : > { %vm598_vm7 = vcmp.eq.s32.totalorder %v3647_v9, %v558_v34  ;;  %v1111_v34 = vld [vmem:[#allocation2 + $0x2a0] sm:$0xff]  ;;  %2974 = vmatpush3.bf16.msra.mxu1 %v2973_v14 }
  0xe4   : > { %3146 = vset.pattern.permute.xlu1 %v3383_v48  ;;  %v555_v4 = vpop.permute.xlu0 %554  ;;  %v1115_v14 = vld [vmem:[#allocation2 + $0x2c0] sm:$0xff] }
  0xe5   : > { %vm597_vm5 = vcmp.eq.s32.totalorder %v3647_v9, %v555_v4  ;;  %299 = vperm.xlu1 %3146, %v3538_v31   ;;  %3197 = vset.pattern.permute.xlu0 %v3385_v5  ;;  %v1112_v4 = vld [vmem:[#allocation2 + $0x2a8] sm:$0xff] }
  0xe6   : > { %2364 = vmatprep.mubr.msk.f32.mxu1 %vm597_vm5, %v3387_v12  ;;  %677 = vperm.xlu0 %3197, %v3580_v43   ;;  %v2943_v46 = vpack.c.bf16 %v1112_v4, %v1111_v34  ;;  %v1131_v34 = vld [vmem:[#allocation2 + $0x340] sm:$0xff]  ;;  %v1132_v4 = vld [vmem:[#allocation2 + $0x348] sm:$0xff] }
  0xe7   : > { %v462_v24 = vpop.permute.xlu1 %461  ;;  %2365 = vmatmul.mubr.msk.f32.gmra.mrb[4].mxu1 %vm501_vm6, %v3387_v12  ;;  %v2985_v32 = vpack.c.bf16 %v1132_v4, %v1131_v34  ;;  %v1138_v34 = vld [vmem:[#allocation2 + $0x378] sm:$0xff] }
  0xe8   : > { %2366 = vmatprep.mubr.msk.f32.mxu1 %vm598_vm7, %v3387_v12  ;;  %v564_v36 = vpop.permute.xlu0 %563  ;;  %vm502_vm8 = vcmp.eq.s32.totalorder %v3647_v9, %v462_v24  ;;  %v1143_v24 = vld [vmem:[#allocation2 + $0x3a0] sm:$0xff] }
  0xe9   : > { %3147 = vset.pattern.permute.xlu1 %v3380_v0  ;;  %vm600_vm10 = vcmp.eq.s32.totalorder %v3647_v9, %v564_v36  ;;  %v1144_v36 = vld [vmem:[#allocation2 + $0x3a8] sm:$0xff] }
  0xea   : > { %587 = vperm.xlu1 %3147, %v3538_v31   ;;  %686 = vperm.xlu0 %3197, %v3586_v51  }
  0xeb   : > { %2367 = vmatmul.mubr.msk.f32.gmra.mrb[6].mxu1 %vm502_vm8, %v3387_v12 }
  0xec   : > { %v3725_v38 = vpop.permute.xlu1 %272  ;;  %v3727_v39 = vpop.permute.xlu0 %572 }
  0xed   : > { %vm311_vm5 = vcmp.eq.s32.totalorder %v3647_v9, %v3725_v38  ;;  %v1119_v38 = vld [vmem:[#allocation2 + $0x2e0] sm:$0xff] }
  0xee   : > { %3149 = vset.pattern.permute.xlu1 %v3381_v1  ;;  %3202 = vset.pattern.permute.xlu0 %v3386_v3 }
  0xef   : > { %398 = vperm.xlu1 %3149, %v3586_v51   ;;  %785 = vperm.xlu0 %3202, %v3617_v62  }
  0xf0   : > { %v3732_v43 = vpop.permute.xlu0 %581 }
  0xf1   : > { %v561_v31 = vpop.permute.xlu1 %560 }
  0xf2   : > { %vm599_vm11 = vcmp.eq.s32.totalorder %v3647_v9, %v561_v31  ;;  %v2941_v31 = vpack.c.bf16 %v1094_v29, %v1093_v26  ;;  %v1116_v26 = vld [vmem:[#allocation2 + $0x2c8] sm:$0xff] }
  0xf3   : > { %3150 = vset.pattern.permute.xlu1 %v3383_v48  ;;  %2368 = vmatprep.mubr.msk.f32.mxu1 %vm599_vm11, %v3387_v12  ;;  %v1110_v48 = vld [vmem:[#allocation2 + $0x298] sm:$0xff] }
  0xf4   : > { %302 = vperm.xlu1 %3150, %v3586_v51   ;;  %v3741_v50 = vpop.permute.xlu0 %590  ;;  %2369 = vmatmul.mubr.msk.f32.gmra.mrb[8].mxu1 %vm503_vm9, %v3387_v12  ;;  %v2939_v23 = vpack.c.bf16 %v1110_v48, %v1109_v55  ;;  %v1129_v55 = vld [vmem:[#allocation2 + $0x330] sm:$0xff]  ;;  %v1130_v48 = vld [vmem:[#allocation2 + $0x338] sm:$0xff] }
  0xf5   : > { %2370 = vmatprep.mubr.msk.f32.mxu1 %vm600_vm10, %v3387_v12  ;;  %3205 = vset.pattern.permute.xlu0 %v3388_v16  ;;  %v2981_v22 = vpack.c.bf16 %v1130_v48, %v1129_v55 }
  0xf6   : > { %v3745_v56 = vpop.permute.xlu1 %371  ;;  %881 = vperm.xlu0 %3205, %v3617_v62  }
  0xf7   : > { %vm408_vm6 = vcmp.eq.s32.totalorder %v3647_v9, %v3745_v56  ;;  %v1135_v56 = vld [vmem:[#allocation2 + $0x360] sm:$0xff] }
  0xf8   : > { %3152 = vset.pattern.permute.xlu1 %v3382_v7 }
  0xf9   : > { %494 = vperm.xlu1 %3152, %v3586_v51   ;;  %v261_v20 = vpop.permute.xlu0 %260  ;;  %v2975_v51 = vpack.c.bf16 %v1144_v36, %v1143_v24  ;;  %v2951_v24 = vpack.c.bf16 %v1116_v26, %v1115_v14  ;;  %v1099_v36 = vld [vmem:[#allocation2 + $0x240] sm:$0xff]  ;;  %v1104_v14 = vld [vmem:[#allocation2 + $0x268] sm:$0xff] }
  0xfa   : > { %vm307_vm12 = vcmp.eq.s32.totalorder %v3647_v9, %v261_v20  ;;  %3206 = vset.pattern.permute.xlu0 %v3384_v63  ;;  %v1147_v20 = vld [vmem:[#allocation2 + $0x3c0] sm:$0xff]  ;;  %v2953_v47 = vpack.c.bf16 %v1100_v42, %v1099_v36 }
  0xfb   : > { %v3754_v40 = vpop.permute.xlu1 %275  ;;  %2329 = vmatmul.mubr.msk.f32.vlgmr.msra.gmra.mrb[0].mxu0 %vm307_vm12, %v3387_v12  ;;  %2976 = vmatprep.subr.bf16.mxu1 %v2975_v51  ;;  %v1149_v51 = vld [vmem:[#allocation2 + $0x3d0] sm:$0xff]  ;;  %vm410_vm12 = vcmp.eq.s32.totalorder %v3647_v9, %v3664_v15 }
  0xfc   : > { %2330 = vmatprep.mubr.msk.f32.mxu0 %vm404_vm13, %v3387_v12  ;;  %2938 = vmatpush3.bf16.msra.mxu0 %v2937_v11  ;;  %v1098_v11 = vld [vmem:[#allocation2 + $0x238] sm:$0xff]  ;;  %vm312_vm8 = vcmp.eq.s32.totalorder %v3647_v9, %v3754_v40  ;;  %v1121_v40 = vld [vmem:[#allocation2 + $0x2f0] sm:$0xff] }
  0xfd   : > { %3153 = vset.pattern.permute.xlu1 %v3381_v1  ;;  %v264_v45 = vpop.permute.xlu0 %263  ;;  %2940 = vmatprep.subr.bf16.mxu0 %v2939_v23  ;;  %v2979_v1 = vpack.c.bf16 %v1146_v54, %v1145_v53  ;;  %v1148_v23 = vld [vmem:[#allocation2 + $0x3c8] sm:$0xff]  ;;  %v2949_v25 = vpack.c.bf16 %v1098_v11, %v1097_v10  ;;  %v1102_v54 = vld [vmem:[#allocation2 + $0x258] sm:$0xff] }
  0xfe   : > { %vm308_vm14 = vcmp.eq.s32.totalorder %v3647_v9, %v264_v45  ;;  %401 = vperm.xlu1 %3153, %v3617_v62   ;;  %2978 = vmatpush3.bf16.msra.mxu1 %v2977_v44  ;;  %v2983_v29 = vpack.c.bf16 %v1148_v23, %v1147_v20  ;;  %v1133_v44 = vld [vmem:[#allocation2 + $0x350] sm:$0xff]  ;;  %v1134_v45 = vld [vmem:[#allocation2 + $0x358] sm:$0xff]  ;;  %v1152_v53 = vld [vmem:[#allocation2 + $0x3e8] sm:$0xff] }
  0xff   : > { %2331 = vmatmul.mubr.msk.f32.gmra.mrb[2].mxu0 %vm308_vm14, %v3387_v12  ;;  %2980 = vmatprep.subr.bf16.mxu1 %v2979_v1  ;;  %v2989_v49 = vpack.c.bf16 %v1134_v45, %v1133_v44  ;;  %v1120_v1 = vld [vmem:[#allocation2 + $0x2e8] sm:$0xff]  ;;  %v2991_v55 = vpack.c.bf16 %v1152_v53, %v1151_v52  ;;  %v1122_v23 = vld [vmem:[#allocation2 + $0x2f8] sm:$0xff]  ;;  %vm506_vm14 = vcmp.eq.s32.totalorder %v3647_v9, %v3694_v28  ;;  %v3272_v44 = vld [vmem:[%s3511_s9 + $0x20] sm:$0xff] }
 0x100   : > { %v468_v57 = vpop.permute.xlu1 %467  ;;  %2332 = vmatprep.mubr.msk.f32.mxu0 %vm405_vm15, %v3387_v12  ;;  %2942 = vmatpush3.bf16.msra.mxu0 %v2941_v31  ;;  %v2987_v31 = vpack.c.bf16 %v1150_v41, %v1149_v51  ;;  %v2959_v11 = vpack.c.bf16 %v1120_v1, %v1119_v38  ;;  %v2963_v15 = vpack.c.bf16 %v1122_v23, %v1121_v40  ;;  %v3271_v28 = vld [vmem:[%s3511_s9 + $0x8] sm:$0xff] }
 0x101   : > { %vm504_vm0 = vcmp.eq.s32.totalorder %v3647_v9, %v468_v57  ;;  %v270_v61 = vpop.permute.xlu0 %269  ;;  %2944 = vmatprep.subr.bf16.mxu0 %v2943_v46  ;;  %v1117_v46 = vld [vmem:[#allocation2 + $0x2d0] sm:$0xff]  ;;  %v1136_v57 = vld [vmem:[#allocation2 + $0x368] sm:$0xff]  ;;  %vm603_vm15 = vcmp.eq.s32.totalorder %v3647_v9, %v3727_v39 }
 0x102   : > { %3154 = vset.pattern.permute.xlu1 %v3380_v0  ;;  %2371 = vmatmul.mubr.msk.f32.gmra.mrb[10].mxu1 %vm504_vm0, %v3387_v12  ;;  %vm310_vm3 = vcmp.eq.s32.totalorder %v3647_v9, %v270_v61  ;;  %v1153_v61 = vld [vmem:[#allocation2 + $0x3f0] sm:$0xff]  ;;  %v2993_v20 = vpack.c.bf16 %v1136_v57, %v1135_v56  ;;  %v3274_v57 = vld [vmem:[%s3511_s9 + $0x40] sm:$0xff] }
 0x103   : > { %593 = vperm.xlu1 %3154, %v3617_v62   ;;  %2333 = vmatmul.mubr.msk.f32.gmra.mrb[4].mxu0 %vm309_vm1, %v3387_v12 }
 0x104   : > { %2334 = vmatprep.mubr.msk.f32.mxu0 %vm406_vm2, %v3387_v12  ;;  %2946 = vmatpush3.bf16.msra.mxu0 %v2945_v58  ;;  %v2957_v58 = vpack.c.bf16 %v1102_v54, %v1101_v13  ;;  %v3273_v13 = vld [vmem:[%s3511_s9 + $0x38] sm:$0xff] }
 0x105   : > { %v375_v0 = vpop.permute.xlu1 %374  ;;  %2948 = vmatprep.subr.bf16.mxu0 %v2947_v8  ;;  %2982 = vmatpush3.bf16.msra.mxu1 %v2981_v22  ;;  %v279_v48 = vpop.permute.xlu0 %278  ;;  %v1154_v8 = vld [vmem:[#allocation2 + $0x3f8] sm:$0xff]  ;;  %v1103_v22 = vld [vmem:[#allocation2 + $0x260] sm:$0xff] }
 0x106   : > { %2984 = vmatprep.subr.bf16.mxu1 %v2983_v29  ;;  %vm409_vm9 = vcmp.eq.s32.totalorder %v3647_v9, %v375_v0  ;;  %vm313_vm11 = vcmp.eq.s32.totalorder %v3647_v9, %v279_v48  ;;  %v2995_v26 = vpack.c.bf16 %v1154_v8, %v1153_v61  ;;  %v1137_v29 = vld [vmem:[#allocation2 + $0x370] sm:$0xff]  ;;  %v2961_v4 = vpack.c.bf16 %v1104_v14, %v1103_v22 }
 0x107   : > { %3155 = vset.pattern.permute.xlu1 %v3382_v7  ;;  %2335 = vmatmul.mubr.msk.f32.gmra.mrb[6].mxu0 %vm310_vm3, %v3387_v12  ;;  %v1105_v0 = vld [vmem:[#allocation2 + $0x270] sm:$0xff] }
 0x108   : > { %497 = vperm.xlu1 %3155, %v3617_v62   ;;  %2336 = vmatprep.mubr.msk.f32.mxu0 %vm407_vm4, %v3387_v12  ;;  %v2955_v62 = vpack.c.bf16 %v1118_v17, %v1117_v46  ;;  %v3275_v22 = vld [vmem:[%s3511_s9 + $0x50] sm:$0xff] }
 0x109   : > { %2950 = vmatpush3.bf16.msra.mxu0 %v2949_v25  ;;  %2986 = vmatpush3.bf16.msra.mxu1 %v2985_v32  ;;  %v1106_v25 = vld [vmem:[#allocation2 + $0x278] sm:$0xff]  ;;  %v288_v41 = vpop.permute.xlu0 %287 }
 0x10a   : > { %v567_v7 = vpop.permute.xlu1 %566  ;;  %2952 = vmatprep.subr.bf16.mxu0 %v2951_v24  ;;  %2988 = vmatprep.subr.bf16.mxu1 %v2987_v31  ;;  %v2997_v24 = vpack.c.bf16 %v1138_v34, %v1137_v29  ;;  %vm316_vm4 = vcmp.eq.s32.totalorder %v3647_v9, %v288_v41  ;;  %v3276_v29 = vld [vmem:[%s3511_s9 + $0x58] sm:$0xff] }
 0x10b   : > { %vm601_vm7 = vcmp.eq.s32.totalorder %v3647_v9, %v567_v7  ;;  %2337 = vmatmul.mubr.msk.f32.gmra.mrb[8].mxu0 %vm311_vm5, %v3387_v12  ;;  %vm413_vm5 = vcmp.eq.s32.totalorder %v3647_v9, %v3671_v18 }
 0x10c   : > { %3156 = vset.pattern.permute.xlu1 %v3385_v5  ;;  %2338 = vmatprep.mubr.msk.f32.mxu0 %vm408_vm6, %v3387_v12 }
 0x10d   : > { %2372 = vmatprep.mubr.msk.f32.mxu1 %vm601_vm7, %v3387_v12  ;;  %644 = vperm.xlu1 %3156, %v3514_v2  }
 0x10e   : > { %2954 = vmatpush3.bf16.msra.mxu0 %v2953_v47  ;;  %2990 = vmatpush3.bf16.msra.mxu1 %v2989_v49 }
 0x10f   : > { %v471_v10 = vpop.permute.xlu1 %470  ;;  %2339 = vmatmul.mubr.msk.f32.gmra.mrb[10].mxu0 %vm312_vm8, %v3387_v12  ;;  %2956 = vmatprep.subr.bf16.mxu0 %v2955_v62 }
 0x110   : > { %vm505_vm10 = vcmp.eq.s32.totalorder %v3647_v9, %v471_v10  ;;  %2340 = vmatprep.mubr.msk.f32.mxu0 %vm409_vm9, %v3387_v12  ;;  %2992 = vmatprep.subr.bf16.mxu1 %v2991_v55 }
 0x111   : > { %3157 = vset.pattern.permute.xlu1 %v3384_v63  ;;  %2373 = vmatmul.mubr.msk.f32.gmra.mrb[12].mxu1 %vm505_vm10, %v3387_v12  ;;  %vm509_vm10 = vcmp.eq.s32.totalorder %v3647_v9, %v3700_v30  ;;  %v297_v30 = vpop.permute.xlu0 %296 }
 0x112   : > { %932 = vperm.xlu1 %3157, %v3514_v2   ;;  %2958 = vmatpush3.bf16.msra.mxu0 %v2957_v58  ;;  %v2965_v2 = vpack.c.bf16 %v1106_v25, %v1105_v0 }
 0x113   : > { %2341 = vmatmul.mubr.msk.f32.gmra.mrb[12].mxu0 %vm313_vm11, %v3387_v12  ;;  %2960 = vmatprep.subr.bf16.mxu0 %v2959_v11  ;;  %vm606_vm11 = vcmp.eq.s32.totalorder %v3647_v9, %v3732_v43 }
 0x114   : > { %v282_v32 = vpop.permute.xlu1 %281  ;;  %2342 = vmatprep.mubr.msk.f32.mxu0 %vm410_vm12, %v3387_v12  ;;  %2994 = vmatpush3.bf16.msra.mxu1 %v2993_v20 }
 0x115   : > { %vm314_vm13 = vcmp.eq.s32.totalorder %v3647_v9, %v282_v32  ;;  %2996 = vmatprep.subr.bf16.mxu1 %v2995_v26  ;;  %v3870_v46 = vpop.permute.xlu0 %305 }
 0x116   : > { %3158 = vset.pattern.permute.xlu1 %v3386_v3  ;;  %2962 = vmatpush3.bf16.msra.mxu0 %v2961_v4 }
 0x117   : > { %743 = vperm.xlu1 %3158, %v3528_v19   ;;  %2343 = vmatmul.mubr.msk.f32.gmra.mrb[14].mxu0 %vm314_vm13, %v3387_v12 }
 0x118   : > { %2964 = vmatprep.subr.bf16.mxu0 %v2963_v15  ;;  %2998 = vmatpush3.bf16.msra.mxu1 %v2997_v24  ;;  %v3277_v24 = vld [vmem:[%s3511_s9 + $0x60] sm:$0xff] }
 0x119   : > { %v570_v36 = vpop.permute.xlu1 %569  ;;  %v3878_v7 = vpop.permute.xlu0 %935 }
 0x11a   : > { %vm602_vm0 = vcmp.eq.s32.totalorder %v3647_v9, %v570_v36  ;;  %2966 = vmatpush3.bf16.msra.mxu0 %v2965_v2 }
 0x11b   : > { %3159 = vset.pattern.permute.xlu1 %v3385_v5  ;;  %2374 = vmatprep.mubr.msk.f32.mxu1 %vm602_vm0, %v3387_v12  ;;  %vm319_vm0 = vcmp.eq.s32.totalorder %v3647_v9, %v297_v30 }
 0x11c   : > { %647 = vperm.xlu1 %3159, %v3528_v19   ;;  %2375 = vmatmul.mubr.msk.f32.gmra.mrb[14].mxu1 %vm506_vm14, %v3387_v12 }
 0x11d   : > { %2376 = vmatprep.mubr.msk.f32.mxu1 %vm603_vm15, %v3387_v12  ;;  %v3889_v49 = vpop.permute.xlu0 %944 }
 0x11e   : > { %v381_v51 = vpop.permute.xlu1 %380 }
 0x11f   : > { %vm411_vm1 = vcmp.eq.s32.totalorder %v3647_v9, %v381_v51 }
 0x120   : > { %3161 = vset.pattern.permute.xlu1 %v3388_v16  ;;  %2344 = vmatprep.mubr.msk.f32.mxu0 %vm411_vm1, %v3387_v12  ;;  %vm416_vm1 = vcmp.eq.s32.totalorder %v3647_v9, %v3676_v21 }
 0x121   : > { %839 = vperm.xlu1 %3161, %v3271_v28   ;;  %v3896_v21 = vpop.permute.xlu0 %650  ;;  %v3278_v28 = vld [vmem:[%s3511_s9 + $0x68] sm:$0xff] }
 0x123   : > { %v285_v39 = vpop.permute.xlu1 %284 }
 0x124   : > { %vm315_vm2 = vcmp.eq.s32.totalorder %v3647_v9, %v285_v39 }
 0x125   : > { %3162 = vset.pattern.permute.xlu1 %v3386_v3  ;;  %2345 = vmatmul.mubr.msk.f32.gmra.mrb[16].mxu0 %vm315_vm2, %v3387_v12  ;;  %v3902_v62 = vpop.permute.xlu0 %659 }
 0x126   : > { %746 = vperm.xlu1 %3162, %v3544_v37  }
 0x128   : > { %v477_v19 = vpop.permute.xlu1 %476 }
 0x129   : > { %vm507_vm3 = vcmp.eq.s32.totalorder %v3647_v9, %v477_v19 }
 0x12a   : > { %3163 = vset.pattern.permute.xlu1 %v3384_v63  ;;  %2377 = vmatmul.mubr.msk.f32.gmra.mrb[16].mxu1 %vm507_vm3, %v3387_v12 }
 0x12b   : > { %938 = vperm.xlu1 %3163, %v3544_v37  }
 0x12d   : > { %v384_v42 = vpop.permute.xlu1 %383 }
 0x12e   : > { %vm412_vm6 = vcmp.eq.s32.totalorder %v3647_v9, %v384_v42 }
 0x12f   : > { %3164 = vset.pattern.permute.xlu1 %v3388_v16  ;;  %2346 = vmatprep.mubr.msk.f32.mxu0 %vm412_vm6, %v3387_v12  ;;  %vm512_vm6 = vcmp.eq.s32.totalorder %v3647_v9, %v3706_v33 }
 0x130   : > { %842 = vperm.xlu1 %3164, %v3544_v37   ;;  %2347 = vmatmul.mubr.msk.f32.gmra.mrb[18].mxu0 %vm316_vm4, %v3387_v12 }
 0x131   : > { %2348 = vmatprep.mubr.msk.f32.mxu0 %vm413_vm5, %v3387_v12 }
 0x132   : > { %v576_v31 = vpop.permute.xlu1 %575 }
 0x133   : > { %vm604_vm7 = vcmp.eq.s32.totalorder %v3647_v9, %v576_v31 }
 0x134   : > { %3165 = vset.pattern.permute.xlu1 %v3385_v5  ;;  %2378 = vmatprep.mubr.msk.f32.mxu1 %vm604_vm7, %v3387_v12  ;;  %vm609_vm7 = vcmp.eq.s32.totalorder %v3647_v9, %v3741_v50 }
 0x135   : > { %653 = vperm.xlu1 %3165, %v3557_v6  }
 0x137   : > { %v480_v18 = vpop.permute.xlu1 %479 }
 0x138   : > { %vm508_vm8 = vcmp.eq.s32.totalorder %v3647_v9, %v480_v18 }
 0x139   : > { %3166 = vset.pattern.permute.xlu1 %v3384_v63  ;;  %2379 = vmatmul.mubr.msk.f32.gmra.mrb[18].mxu1 %vm508_vm8, %v3387_v12 }
 0x13a   : > { %941 = vperm.xlu1 %3166, %v3557_v6  }
 0x13c   : > { %v291_v37 = vpop.permute.xlu1 %290 }
 0x13d   : > { %vm317_vm9 = vcmp.eq.s32.totalorder %v3647_v9, %v291_v37 }
 0x13e   : > { %3167 = vset.pattern.permute.xlu1 %v3386_v3  ;;  %2349 = vmatmul.mubr.msk.f32.gmra.mrb[20].mxu0 %vm317_vm9, %v3387_v12 }
 0x13f   : > { %752 = vperm.xlu1 %3167, %v3272_v44  }
 0x141   : > { %v579_v45 = vpop.permute.xlu1 %578 }
 0x142   : > { %vm605_vm12 = vcmp.eq.s32.totalorder %v3647_v9, %v579_v45 }
 0x143   : > { %3168 = vset.pattern.permute.xlu1 %v3385_v5  ;;  %2380 = vmatprep.mubr.msk.f32.mxu1 %vm605_vm12, %v3387_v12  ;;  %vm322_vm12 = vcmp.eq.s32.totalorder %v3647_v9, %v3870_v46 }
 0x144   : > { %656 = vperm.xlu1 %3168, %v3272_v44   ;;  %2381 = vmatmul.mubr.msk.f32.gmra.mrb[20].mxu1 %vm509_vm10, %v3387_v12 }
 0x145   : > { %2382 = vmatprep.mubr.msk.f32.mxu1 %vm606_vm11, %v3387_v12 }
 0x146   : > { %v390_v6 = vpop.permute.xlu1 %389 }
 0x147   : > { %vm414_vm13 = vcmp.eq.s32.totalorder %v3647_v9, %v390_v6  ;;  %v3279_v6 = vld [vmem:[%s3511_s9 + $0x70] sm:$0xff] }
 0x148   : > { %3170 = vset.pattern.permute.xlu1 %v3388_v16  ;;  %2350 = vmatprep.mubr.msk.f32.mxu0 %vm414_vm13, %v3387_v12 }
 0x149   : > { %848 = vperm.xlu1 %3170, %v3272_v44  }
 0x14b   : > { %v294_v43 = vpop.permute.xlu1 %293 }
 0x14c   : > { %vm318_vm14 = vcmp.eq.s32.totalorder %v3647_v9, %v294_v43 }
 0x14d   : > { %3171 = vset.pattern.permute.xlu1 %v3386_v3  ;;  %2351 = vmatmul.mubr.msk.f32.gmra.mrb[22].mxu0 %vm318_vm14, %v3387_v12 }
 0x14e   : > { %755 = vperm.xlu1 %3171, %v3568_v27  }
 0x150   : > { %v486_v17 = vpop.permute.xlu1 %485 }
 0x151   : > { %vm510_vm15 = vcmp.eq.s32.totalorder %v3647_v9, %v486_v17 }
 0x152   : > { %3172 = vset.pattern.permute.xlu1 %v3384_v63  ;;  %2383 = vmatmul.mubr.msk.f32.gmra.mrb[22].mxu1 %vm510_vm15, %v3387_v12 }
 0x153   : > { %947 = vperm.xlu1 %3172, %v3568_v27  }
 0x155   : > { %v393_v47 = vpop.permute.xlu1 %392 }
 0x156   : > { %vm415_vm2 = vcmp.eq.s32.totalorder %v3647_v9, %v393_v47 }
 0x157   : > { %3173 = vset.pattern.permute.xlu1 %v3388_v16  ;;  %2352 = vmatprep.mubr.msk.f32.mxu0 %vm415_vm2, %v3387_v12 }
 0x158   : > { %851 = vperm.xlu1 %3173, %v3568_v27   ;;  %2353 = vmatmul.mubr.msk.f32.gmra.mrb[24].mxu0 %vm319_vm0, %v3387_v12 }
 0x159   : > { %2354 = vmatprep.mubr.msk.f32.mxu0 %vm416_vm1, %v3387_v12 }
 0x15a   : > { %v585_v52 = vpop.permute.xlu1 %584 }
 0x15b   : > { %vm607_vm3 = vcmp.eq.s32.totalorder %v3647_v9, %v585_v52 }
 0x15c   : > { %3174 = vset.pattern.permute.xlu1 %v3385_v5  ;;  %2384 = vmatprep.mubr.msk.f32.mxu1 %vm607_vm3, %v3387_v12  ;;  %vm980_vm3 = vcmp.eq.s32.totalorder %v3647_v9, %v3878_v7 }
 0x15d   : > { %662 = vperm.xlu1 %3174, %v3600_v59  }
 0x15f   : > { %v489_v53 = vpop.permute.xlu1 %488 }
 0x160   : > { %vm511_vm4 = vcmp.eq.s32.totalorder %v3647_v9, %v489_v53 }
 0x161   : > { %3175 = vset.pattern.permute.xlu1 %v3384_v63  ;;  %2385 = vmatmul.mubr.msk.f32.gmra.mrb[24].mxu1 %vm511_vm4, %v3387_v12 }
 0x162   : > { %950 = vperm.xlu1 %3175, %v3600_v59   ;;  %v3913_v59 = vpop.permute.xlu0 %668 }
 0x164   : > { %v300_v27 = vpop.permute.xlu1 %299 }
 0x165   : > { %vm320_vm5 = vcmp.eq.s32.totalorder %v3647_v9, %v300_v27 }
 0x166   : > { %3176 = vset.pattern.permute.xlu1 %v3386_v3  ;;  %2355 = vmatmul.mubr.msk.f32.gmra.mrb[26].mxu0 %vm320_vm5, %v3387_v12  ;;  %v741_v33 = vpop.permute.xlu0 %740 }
 0x167   : > { %761 = vperm.xlu1 %3176, %v3273_v13   ;;  %vm787_vm14 = vcmp.eq.s32.totalorder %v3647_v9, %v741_v33  ;;  %v3280_v33 = vld [vmem:[%s3511_s9 + $0x78] sm:$0xff]  ;;  %s3315_s9 = scalar_lea.vmem %s3314_s30, 4096 }
 0x168   : > { %p3317_p3 = scmp.lt.s32.totalorder %s3315_s9, %s3309_s7 }
 0x169   : > { %v588_v54 = vpop.permute.xlu1 %587 }
 0x16a   : > { %vm608_vm8 = vcmp.eq.s32.totalorder %v3647_v9, %v588_v54  ;;  %v3926_v1 = vpop.permute.xlu0 %749  ;;  %p3318_p4 = por %p3317_p3, %p3316_p2 }
 0x16b   : > { %3177 = vset.pattern.permute.xlu1 %v3385_v5  ;;  %2386 = vmatprep.mubr.msk.f32.mxu1 %vm608_vm8, %v3387_v12  ;;  %vm693_vm8 = vcmp.eq.s32.totalorder %v3647_v9, %v3896_v21 }
 0x16c   : > { %665 = vperm.xlu1 %3177, %v3273_v13   ;;  %2387 = vmatmul.mubr.msk.f32.gmra.mrb[26].mxu1 %vm512_vm6, %v3387_v12  ;;  %p3319_p7 = pnand %p3318_p4, %p3312_p12 }
 0x16d   : > { %2388 = vmatprep.mubr.msk.f32.mxu1 %vm609_vm7, %v3387_v12 }
 0x16e   : > { %v399_v38 = vpop.permute.xlu1 %398  ;;  %v3932_v48 = vpop.permute.xlu0 %758 }
 0x16f   : > { %vm417_vm9 = vcmp.eq.s32.totalorder %v3647_v9, %v399_v38 }
 0x170   : > { %3178 = vset.pattern.permute.xlu1 %v3388_v16  ;;  %2356 = vmatprep.mubr.msk.f32.mxu0 %vm417_vm9, %v3387_v12  ;;  %vm790_vm9 = vcmp.eq.s32.totalorder %v3647_v9, %v3926_v1 }
 0x171   : > { %857 = vperm.xlu1 %3178, %v3273_v13  }
 0x172   : > { %v3943_v58 = vpop.permute.xlu0 %767 }
 0x173   : > { %v303_v50 = vpop.permute.xlu1 %302 }
 0x174   : > { %vm321_vm10 = vcmp.eq.s32.totalorder %v3647_v9, %v303_v50 }
 0x175   : > { %3179 = vset.pattern.permute.xlu1 %v3386_v3  ;;  %2357 = vmatmul.mubr.msk.f32.gmra.mrb[28].mxu0 %vm321_vm10, %v3387_v12 }
 0x176   : > { %764 = vperm.xlu1 %3179, %v3574_v35   ;;  %v3950_v8 = vpop.permute.xlu0 %776 }
 0x178   : > { %v495_v55 = vpop.permute.xlu1 %494 }
 0x179   : > { %vm513_vm11 = vcmp.eq.s32.totalorder %v3647_v9, %v495_v55 }
 0x17a   : > { %3181 = vset.pattern.permute.xlu1 %v3384_v63  ;;  %2389 = vmatmul.mubr.msk.f32.gmra.mrb[28].mxu1 %vm513_vm11, %v3387_v12  ;;  %v837_v11 = vpop.permute.xlu0 %836 }
 0x17b   : > { %956 = vperm.xlu1 %3181, %v3574_v35   ;;  %vm883_vm2 = vcmp.eq.s32.totalorder %v3647_v9, %v837_v11 }
 0x17d   : > { %v402_v56 = vpop.permute.xlu1 %401 }
 0x17e   : > { %vm418_vm13 = vcmp.eq.s32.totalorder %v3647_v9, %v402_v56  ;;  %v846_v51 = vpop.permute.xlu0 %845 }
 0x17f   : > { %3182 = vset.pattern.permute.xlu1 %v3388_v16  ;;  %2358 = vmatprep.mubr.msk.f32.mxu0 %vm418_vm13, %v3387_v12 }
 0x180   : > { %860 = vperm.xlu1 %3182, %v3274_v57   ;;  %2359 = vmatmul.mubr.msk.f32.gmra.mrb[30].mxu0 %vm322_vm12, %v3387_v12 }
 0x181   : > { %2392 = vmatprep.mubr.msk.f32.mxu0 %vm787_vm14, %v3387_v12  ;;  %vm886_vm14 = vcmp.eq.s32.totalorder %v3647_v9, %v846_v51 }
 0x182   : > { %v594_v35 = vpop.permute.xlu1 %593  ;;  %v4027_v7 = vpop.permute.xlu0 %854 }
 0x183   : > { %vm610_vm15 = vcmp.eq.s32.totalorder %v3647_v9, %v594_v35 }
 0x184   : > { %3183 = vset.pattern.permute.xlu1 %v3385_v5  ;;  %2390 = vmatprep.mubr.msk.f32.mxu1 %vm610_vm15, %v3387_v12  ;;  %vm983_vm15 = vcmp.eq.s32.totalorder %v3647_v9, %v3889_v49  ;;  %v4036_v49 = vld [vmem:[%s4441_s2] ss:$0 sm:$0xff] }
 0x185   : > { %671 = vperm.xlu1 %3183, %v3606_v60  }
 0x186   : > { %v4043_v13 = vpop.permute.xlu0 %863 }
 0x187   : > { %v498_v61 = vpop.permute.xlu1 %497 }
 0x188   : > { %vm514_vm0 = vcmp.eq.s32.totalorder %v3647_v9, %v498_v61 }
 0x189   : > { %3184 = vset.pattern.permute.xlu1 %v3384_v63  ;;  %2391 = vmatmul.mubr.msk.f32.gmra.mrb[30].mxu1 %vm514_vm0, %v3387_v12 }
 0x18a   : > { %959 = vperm.xlu1 %3184, %v3606_v60  }
 0x18c   : > { %v645_v10 = vpop.permute.xlu1 %644 }
 0x18d   : > { %vm691_vm1 = vcmp.eq.s32.totalorder %v3647_v9, %v645_v10 }
 0x18e   : > { %3185 = vset.pattern.permute.xlu1 %v3386_v3  ;;  %2393 = vmatmul.mubr.msk.f32.vlgmr.msra.gmra.mrb[32].mxu0 %vm691_vm1, %v3387_v12 }
 0x18f   : > { %770 = vperm.xlu1 %3185, %v3275_v22  }
 0x191   : > { %v933_v14 = vpop.permute.xlu1 %932 }
 0x192   : > { %vm979_vm4 = vcmp.eq.s32.totalorder %v3647_v9, %v933_v14  ;;  %v1759_v14 = vld [vmem:[%s4442_s3 + $0x8] sm:$0xff] }
 0x193   : > { %3186 = vset.pattern.permute.xlu1 %v3385_v5  ;;  %2424 = vmatprep.mubr.msk.f32.mxu1 %vm979_vm4, %v3387_v12  ;;  %vm696_vm4 = vcmp.eq.s32.totalorder %v3647_v9, %v3902_v62 }
 0x194   : > { %v2575_v60 = vpop.f32.mrb[0].mxu1  ;;  %674 = vperm.xlu1 %3186, %v3275_v22   ;;  %2425 = vmatmul.mubr.msk.f32.vlgmr.msra.gmra.mrb[32].mxu1 %vm883_vm2, %v3387_v12 }
 0x195   : > { %v2576_v40 = vpop.f32.mrb[1].mxu1  ;;  %2426 = vmatprep.mubr.msk.f32.mxu1 %vm980_vm3, %v3387_v12 }
 0x196   : > { %v3967_v20 = vadd.f32 %v2576_v40, %v2575_v60  ;;  %v744_v23 = vpop.permute.xlu1 %743 }
 0x197   : > { %vm788_vm5 = vcmp.eq.s32.totalorder %v3647_v9, %v744_v23 }
 0x198   : > { %3187 = vset.pattern.permute.xlu1 %v3388_v16  ;;  %2394 = vmatprep.mubr.msk.f32.mxu0 %vm788_vm5, %v3387_v12  ;;  %vm793_vm5 = vcmp.eq.s32.totalorder %v3647_v9, %v3932_v48 }
 0x199   : > { %866 = vperm.xlu1 %3187, %v3275_v22   ;;  %v1758_v22 = vld [vmem:[%s4442_s3] sm:$0xff] }
 0x19b   : > { %v648_v26 = vpop.permute.xlu1 %647 }
 0x19c   : > { %vm692_vm6 = vcmp.eq.s32.totalorder %v3647_v9, %v648_v26 }
 0x19d   : > { %3188 = vset.pattern.permute.xlu1 %v3386_v3  ;;  %2395 = vmatmul.mubr.msk.f32.gmra.mrb[34].mxu0 %vm692_vm6, %v3387_v12 }
 0x19e   : > { %773 = vperm.xlu1 %3188, %v3276_v29  }
 0x1a0   : > { %v840_v34 = vpop.permute.xlu1 %839 }
 0x1a1   : > { %vm884_vm7 = vcmp.eq.s32.totalorder %v3647_v9, %v840_v34 }
 0x1a2   : > { %3189 = vset.pattern.permute.xlu1 %v3384_v63  ;;  %2427 = vmatmul.mubr.msk.f32.gmra.mrb[34].mxu1 %vm884_vm7, %v3387_v12 }
 0x1a3   : > { %965 = vperm.xlu1 %3189, %v3276_v29  }
 0x1a4   : > { %v2578_v4 = vpop.f32.mrb[2].mxu1 }
 0x1a5   : > { %v747_v0 = vpop.permute.xlu1 %746  ;;  %v2579_v25 = vpop.f32.mrb[3].mxu1 }
 0x1a6   : > { %vm789_vm10 = vcmp.eq.s32.totalorder %v3647_v9, %v747_v0  ;;  %v3984_v32 = vadd.f32 %v2579_v25, %v2578_v4  ;;  %v1760_v4 = vld [vmem:[%s4442_s3 + $0x10] sm:$0xff]  ;;  %v1761_v0 = vld [vmem:[%s4442_s3 + $0x18] sm:$0xff] }
 0x1a7   : > { %3190 = vset.pattern.permute.xlu1 %v3388_v16  ;;  %2396 = vmatprep.mubr.msk.f32.mxu0 %vm789_vm10, %v3387_v12  ;;  %vm889_vm10 = vcmp.eq.s32.totalorder %v3647_v9, %v4027_v7 }
 0x1a8   : > { %869 = vperm.xlu1 %3190, %v3276_v29   ;;  %2397 = vmatmul.mubr.msk.f32.gmra.mrb[36].mxu0 %vm693_vm8, %v3387_v12 }
 0x1a9   : > { %2398 = vmatprep.mubr.msk.f32.mxu0 %vm790_vm9, %v3387_v12 }
 0x1aa   : > { %v939_v15 = vpop.permute.xlu1 %938 }
 0x1ab   : > { %vm981_vm11 = vcmp.eq.s32.totalorder %v3647_v9, %v939_v15  ;;  %v3003_v15 = vpack.c.bf16 %v1761_v0, %v1760_v4 }
 0x1ac   : > { %3192 = vset.pattern.permute.xlu1 %v3385_v5  ;;  %2428 = vmatprep.mubr.msk.f32.mxu1 %vm981_vm11, %v3387_v12 }
 0x1ad   : > { %680 = vperm.xlu1 %3192, %v3277_v24  }
 0x1af   : > { %v843_v2 = vpop.permute.xlu1 %842 }
 0x1b0   : > { %vm885_vm12 = vcmp.eq.s32.totalorder %v3647_v9, %v843_v2 }
 0x1b1   : > { %3193 = vset.pattern.permute.xlu1 %v3384_v63  ;;  %2429 = vmatmul.mubr.msk.f32.gmra.mrb[36].mxu1 %vm885_vm12, %v3387_v12 }
 0x1b2   : > { %968 = vperm.xlu1 %3193, %v3277_v24  }
 0x1b4   : > { %v654_v36 = vpop.permute.xlu1 %653 }
 0x1b5   : > { %vm694_vm13 = vcmp.eq.s32.totalorder %v3647_v9, %v654_v36 }
 0x1b6   : > { %3195 = vset.pattern.permute.xlu1 %v3386_v3  ;;  %2399 = vmatmul.mubr.msk.f32.gmra.mrb[38].mxu0 %vm694_vm13, %v3387_v12 }
 0x1b7   : > { %779 = vperm.xlu1 %3195, %v3278_v28  }
 0x1b9   : > { %v942_v39 = vpop.permute.xlu1 %941 }
 0x1ba   : > { %vm982_vm0 = vcmp.eq.s32.totalorder %v3647_v9, %v942_v39  ;;  %v2581_v19 = vpop.f32.mrb[4].mxu1  ;;  %v1762_v39 = vld [vmem:[%s4442_s3 + $0x20] sm:$0xff] }
 0x1bb   : > { %3196 = vset.pattern.permute.xlu1 %v3385_v5  ;;  %v2582_v41 = vpop.f32.mrb[5].mxu1  ;;  %2430 = vmatprep.mubr.msk.f32.mxu1 %vm982_vm0, %v3387_v12  ;;  %vm699_vm0 = vcmp.eq.s32.totalorder %v3647_v9, %v3913_v59  ;;  %v1773_v59 = vld [vmem:[%s4442_s3 + $0x78] sm:$0xff] }
 0x1bc   : > { %v4007_v42 = vadd.f32 %v2582_v41, %v2581_v19  ;;  %683 = vperm.xlu1 %3196, %v3278_v28   ;;  %2431 = vmatmul.mubr.msk.f32.gmra.mrb[38].mxu1 %vm886_vm14, %v3387_v12  ;;  %v1763_v19 = vld [vmem:[%s4442_s3 + $0x28] sm:$0xff] }
 0x1bd   : > { %2432 = vmatprep.mubr.msk.f32.mxu1 %vm983_vm15, %v3387_v12 }
 0x1be   : > { %v753_v31 = vpop.permute.xlu1 %752  ;;  %v2584_v18 = vpop.f32.mrb[6].mxu1 }
 0x1bf   : > { %vm791_vm1 = vcmp.eq.s32.totalorder %v3647_v9, %v753_v31  ;;  %v2585_v37 = vpop.f32.mrb[7].mxu1  ;;  %v3007_v31 = vpack.c.bf16 %v1763_v19, %v1762_v39 }
 0x1c0   : > { %v4012_v44 = vadd.f32 %v2585_v37, %v2584_v18  ;;  %3198 = vset.pattern.permute.xlu1 %v3388_v16  ;;  %2400 = vmatprep.mubr.msk.f32.mxu0 %vm791_vm1, %v3387_v12  ;;  %vm796_vm1 = vcmp.eq.s32.totalorder %v3647_v9, %v3943_v58 }
 0x1c1   : > { %875 = vperm.xlu1 %3198, %v3278_v28  }
 0x1c3   : > { %v657_v45 = vpop.permute.xlu1 %656 }
 0x1c4   : > { %vm695_vm2 = vcmp.eq.s32.totalorder %v3647_v9, %v657_v45 }
 0x1c5   : > { %3199 = vset.pattern.permute.xlu1 %v3386_v3  ;;  %2401 = vmatmul.mubr.msk.f32.gmra.mrb[40].mxu0 %vm695_vm2, %v3387_v12 }
 0x1c6   : > { %782 = vperm.xlu1 %3199, %v3279_v6  }
 0x1c7   : > { %v2587_v30 = vpop.f32.mrb[8].mxu1 }
 0x1c8   : > { %v849_v43 = vpop.permute.xlu1 %848  ;;  %v2588_v46 = vpop.f32.mrb[9].mxu1 }
 0x1c9   : > { %vm887_vm3 = vcmp.eq.s32.totalorder %v3647_v9, %v849_v43  ;;  %v4021_v17 = vadd.f32 %v2588_v46, %v2587_v30  ;;  %v1764_v46 = vld [vmem:[%s4442_s3 + $0x30] sm:$0xff] }
 0x1ca   : > { %3200 = vset.pattern.permute.xlu1 %v3384_v63  ;;  %2433 = vmatmul.mubr.msk.f32.gmra.mrb[40].mxu1 %vm887_vm3, %v3387_v12 }
 0x1cb   : > { %974 = vperm.xlu1 %3200, %v3279_v6  }
 0x1cd   : > { %v756_v3 = vpop.permute.xlu1 %755 }
 0x1ce   : > { %vm792_vm6 = vcmp.eq.s32.totalorder %v3647_v9, %v756_v3  ;;  %v2495_v47 = vpop.f32.mrb[0].mxu0 }
 0x1cf   : > { %3201 = vset.pattern.permute.xlu1 %v3388_v16  ;;  %v2496_v52 = vpop.f32.mrb[1].mxu0  ;;  %2402 = vmatprep.mubr.msk.f32.mxu0 %vm792_vm6, %v3387_v12  ;;  %vm892_vm6 = vcmp.eq.s32.totalorder %v3647_v9, %v4043_v13 }
 0x1d0   : > { %v2497_v21 = vadd.f32 %v2496_v52, %v2495_v47  ;;  %878 = vperm.xlu1 %3201, %v3279_v6   ;;  %2403 = vmatmul.mubr.msk.f32.gmra.mrb[42].mxu0 %vm696_vm4, %v3387_v12 }
 0x1d1   : > { %2404 = vmatprep.mubr.msk.f32.mxu0 %vm793_vm5, %v3387_v12 }
 0x1d2   : > { %v1229_v53 = vadd.f32 %v2497_v21, %v4036_v49  ;;  %v948_v27 = vpop.permute.xlu1 %947  ;;  %v2498_v62 = vpop.f32.mrb[2].mxu0 }
 0x1d3   : > { %vm984_vm7 = vcmp.eq.s32.totalorder %v3647_v9, %v948_v27  ;;  %v2499_v16 = vpop.f32.mrb[3].mxu0 }
 0x1d4   : > { %3203 = vset.pattern.permute.xlu1 %v3385_v5  ;;  %2434 = vmatprep.mubr.msk.f32.mxu1 %vm984_vm7, %v3387_v12  ;;  %v4047_v54 = vadd.f32 %v2499_v16, %v2498_v62  ;;  %v4050_v38 = vadd.f32 %v3967_v20, %v1229_v53  ;;  %v4058_v5 = vpop.permute.xlu0 %872  ;;  %v1766_v16 = vld [vmem:[%s4442_s3 + $0x40] sm:$0xff] }
 0x1d5   : > { %689 = vperm.xlu1 %3203, %v3280_v33   ;;  %v2590_v50 = vpop.f32.mrb[10].mxu1 }
 0x1d6   : > { %v2501_v1 = vpop.f32.mrb[4].mxu0  ;;  %v2591_v55 = vpop.f32.mrb[11].mxu1  ;;  %v1234_v53 = vadd.f32 %v4047_v54, %v4036_v49 }
 0x1d7   : > { %v4053_v48 = vadd.f32 %v2591_v55, %v2590_v50  ;;  %v852_v56 = vpop.permute.xlu1 %851  ;;  %v2502_v57 = vpop.f32.mrb[5].mxu0 }
 0x1d8   : > { %vm888_vm8 = vcmp.eq.s32.totalorder %v3647_v9, %v852_v56  ;;  %v2503_v35 = vadd.f32 %v2502_v57, %v2501_v1  ;;  %v954_v34 = vpop.permute.xlu0 %953  ;;  %v1769_v56 = vld [vmem:[%s4442_s3 + $0x58] sm:$0xff] }
 0x1d9   : > { %3204 = vset.pattern.permute.xlu1 %v3384_v63  ;;  %2435 = vmatmul.mubr.msk.f32.gmra.mrb[42].mxu1 %vm888_vm8, %v3387_v12  ;;  %v2999_v63 = vpack.c.bf16 %v1759_v14, %v1758_v22  ;;  %vm986_vm12 = vcmp.eq.s32.totalorder %v3647_v9, %v954_v34 }
 0x1da   : > { %v1239_v61 = vadd.f32 %v2503_v35, %v4036_v49  ;;  %977 = vperm.xlu1 %3204, %v3280_v33   ;;  %v2504_v10 = vpop.f32.mrb[6].mxu0  ;;  %v1767_v33 = vld [vmem:[%s4442_s3 + $0x48] sm:$0xff] }
 0x1db   : > { %v2505_v11 = vpop.f32.mrb[7].mxu0  ;;  %3000 = vmatprep.subr.bf16.mxu0 %v2999_v63  ;;  %3031 = vmatprep.subr.bf16.mxu1 %v2999_v63  ;;  %v3015_v1 = vpack.c.bf16 %v1767_v33, %v1766_v16 }
 0x1dc   : > { %v2506_v60 = vadd.f32 %v2505_v11, %v2504_v10  ;;  %v663_v40 = vpop.permute.xlu1 %662  ;;  %v4068_v20 = vadd.f32 %v4007_v42, %v1239_v61  ;;  %3002 = vmatpush3.bf16.msra.mxu0 %v2999_v63  ;;  %3039 = vmatpush3.bf16.msra.mxu1 %v2999_v63  ;;  %v4131_v61 = vadd.f32 %v3984_v32, %v1234_v53  ;;  %v1771_v32 = vld [vmem:[%s4442_s3 + $0x68] sm:$0xff] }
 0x1dd   : > { %vm697_vm9 = vcmp.eq.s32.totalorder %v3647_v9, %v663_v40  ;;  %3004 = vmatprep.subr.bf16.mxu0 %v3003_v15  ;;  %3032 = vmatprep.subr.bf16.mxu1 %v3003_v15 }
 0x1de   : > { %v1244_v23 = vadd.f32 %v2506_v60, %v4036_v49  ;;  %v2507_v26 = vpop.f32.mrb[8].mxu0  ;;  %2405 = vmatmul.mubr.msk.f32.gmra.mrb[44].mxu0 %vm697_vm9, %v3387_v12  ;;  %v1770_v60 = vld [vmem:[%s4442_s3 + $0x60] sm:$0xff] }
 0x1df   : > { %v2508_v29 = vpop.f32.mrb[9].mxu0  ;;  %v3023_v40 = vpack.c.bf16 %v1771_v32, %v1770_v60 }
 0x1e0   : > { %v2509_v25 = vadd.f32 %v2508_v29, %v2507_v26  ;;  %v4080_v24 = vadd.f32 %v4012_v44, %v1244_v23  ;;  %3006 = vmatpush3.bf16.msra.mxu0 %v3003_v15  ;;  %3040 = vmatpush3.bf16.msra.mxu1 %v3003_v15  ;;  %v1772_v23 = vld [vmem:[%s4442_s3 + $0x70] sm:$0xff] }
 0x1e1   : > { %v951_v2 = vpop.permute.xlu1 %950  ;;  %3008 = vmatprep.subr.bf16.mxu0 %v3007_v31  ;;  %3033 = vmatprep.subr.bf16.mxu1 %v3007_v31  ;;  %v3027_v29 = vpack.c.bf16 %v1773_v59, %v1772_v23 }
 0x1e2   : > { %v1249_v36 = vadd.f32 %v2509_v25, %v4036_v49  ;;  %vm985_vm11 = vcmp.eq.s32.totalorder %v3647_v9, %v951_v2  ;;  %v2510_v51 = vpop.f32.mrb[10].mxu0 }
 0x1e3   : > { %v2511_v28 = vpop.f32.mrb[11].mxu0  ;;  %2436 = vmatprep.mubr.msk.f32.mxu1 %vm985_vm11, %v3387_v12 }
 0x1e4   : > { %v2512_v41 = vadd.f32 %v2511_v28, %v2510_v51  ;;  %v2593_v42 = vpop.f32.mrb[12].mxu1  ;;  %2437 = vmatmul.mubr.msk.f32.gmra.mrb[44].mxu1 %vm889_vm10, %v3387_v12  ;;  %v4096_v18 = vadd.f32 %v4021_v17, %v1249_v36  ;;  %3010 = vmatpush3.bf16.msra.mxu0 %v3007_v31  ;;  %v1765_v17 = vld [vmem:[%s4442_s3 + $0x38] sm:$0xff] }
 0x1e5   : > { %v2594_v37 = vpop.f32.mrb[13].mxu1  ;;  %2438 = vmatprep.mubr.msk.f32.mxu1 %vm986_vm12, %v3387_v12  ;;  %v3011_v7 = vpack.c.bf16 %v1765_v17, %v1764_v46  ;;  %3041 = vmatpush3.bf16.msra.mxu1 %v3007_v31 }
 0x1e6   : > { %v1254_v44 = vadd.f32 %v2512_v41, %v4036_v49  ;;  %v2595_v45 = vadd.f32 %v2594_v37, %v2593_v42  ;;  %v762_v6 = vpop.permute.xlu1 %761  ;;  %v2513_v30 = vpop.f32.mrb[12].mxu0 }
 0x1e7   : > { %vm794_vm13 = vcmp.eq.s32.totalorder %v3647_v9, %v762_v6  ;;  %v2514_v43 = vpop.f32.mrb[13].mxu0  ;;  %3012 = vmatprep.subr.bf16.mxu0 %v3011_v7  ;;  %3034 = vmatprep.subr.bf16.mxu1 %v3011_v7  ;;  %v963_v42 = vpop.permute.xlu0 %962 }
 0x1e8   : > { %v2515_v3 = vadd.f32 %v2514_v43, %v2513_v30  ;;  %2406 = vmatprep.mubr.msk.f32.mxu0 %vm794_vm13, %v3387_v12  ;;  %v4109_v47 = vadd.f32 %v4053_v48, %v1254_v44  ;;  %3014 = vmatpush3.bf16.msra.mxu0 %v3011_v7  ;;  %v1768_v48 = vld [vmem:[%s4442_s3 + $0x50] sm:$0xff]  ;;  %vm989_vm8 = vcmp.eq.s32.totalorder %v3647_v9, %v963_v42 }
 0x1e9   : > { %3042 = vmatpush3.bf16.msra.mxu1 %v3011_v7  ;;  %3016 = vmatprep.subr.bf16.mxu0 %v3015_v1  ;;  %v3019_v10 = vpack.c.bf16 %v1769_v56, %v1768_v48 }
 0x1ea   : > { %v1259_v52 = vadd.f32 %v2515_v3, %v4036_v49  ;;  %v2516_v21 = vpop.f32.mrb[14].mxu0  ;;  %3035 = vmatprep.subr.bf16.mxu1 %v3015_v1 }
 0x1eb   : > { %v666_v27 = vpop.permute.xlu1 %665  ;;  %v2517_v62 = vpop.f32.mrb[15].mxu0 }
 0x1ec   : > { %vm698_vm14 = vcmp.eq.s32.totalorder %v3647_v9, %v666_v27  ;;  %v2518_v50 = vadd.f32 %v2517_v62, %v2516_v21  ;;  %v4121_v55 = vadd.f32 %v2595_v45, %v1259_v52  ;;  %3018 = vmatpush3.bf16.msra.mxu0 %v3015_v1  ;;  %v972_v7 = vpop.permute.xlu0 %971 }
 0x1ed   : > { %2407 = vmatmul.mubr.msk.f32.gmra.mrb[46].mxu0 %vm698_vm14, %v3387_v12  ;;  %3043 = vmatpush3.bf16.msra.mxu1 %v3015_v1  ;;  %vm799_vm14 = vcmp.eq.s32.totalorder %v3647_v9, %v3950_v8 }
 0x1ee   : > { %v1264_v11 = vadd.f32 %v2518_v50, %v4036_v49  ;;  %3020 = vmatprep.subr.bf16.mxu0 %v3019_v10  ;;  %3036 = vmatprep.subr.bf16.mxu1 %v3019_v10 }
 0x1ef   : > { %v2596_v54 = vpop.f32.mrb[14].mxu1 }
 0x1f0   : > { %v858_v57 = vpop.permute.xlu1 %857  ;;  %v2597_v35 = vpop.f32.mrb[15].mxu1  ;;  %3022 = vmatpush3.bf16.msra.mxu0 %v3019_v10 }
 0x1f1   : > { %vm890_vm15 = vcmp.eq.s32.totalorder %v3647_v9, %v858_v57  ;;  %v2598_v22 = vadd.f32 %v2597_v35, %v2596_v54  ;;  %3044 = vmatpush3.bf16.msra.mxu1 %v3019_v10  ;;  %3024 = vmatprep.subr.bf16.mxu0 %v3023_v40  ;;  %v678_v16 = vpop.permute.xlu0 %677 }
 0x1f2   : > { %2439 = vmatmul.mubr.msk.f32.gmra.mrb[46].mxu1 %vm890_vm15, %v3387_v12  ;;  %3037 = vmatprep.subr.bf16.mxu1 %v3023_v40  ;;  %vm702_vm12 = vcmp.eq.s32.totalorder %v3647_v9, %v678_v16 }
 0x1f3   : > { %v4136_v14 = vadd.f32 %v2598_v22, %v1264_v11 }
 0x1f4   : > { %3026 = vmatpush3.bf16.msra.mxu0 %v3023_v40 }
 0x1f5   : > { %v765_v63 = vpop.permute.xlu1 %764  ;;  %3045 = vmatpush3.bf16.msra.mxu1 %v3023_v40  ;;  %3028 = vmatprep.subr.bf16.mxu0 %v3027_v29 }
 0x1f6   : > { %vm795_vm2 = vcmp.eq.s32.totalorder %v3647_v9, %v765_v63  ;;  %3038 = vmatprep.subr.bf16.mxu1 %v3027_v29 }
 0x1f7   : > { %2408 = vmatprep.mubr.msk.f32.mxu0 %vm795_vm2, %v3387_v12  ;;  %vm992_vm2 = vcmp.eq.s32.totalorder %v3647_v9, %v972_v7 }
 0x1f8   : > { %v2519_v26 = vpop.f32.mrb[16].mxu0  ;;  %2409 = vmatmul.mubr.msk.f32.gmra.mrb[48].mxu0 %vm699_vm0, %v3387_v12 }
 0x1f9   : > { %v2520_v58 = vpop.f32.mrb[17].mxu0  ;;  %2410 = vmatprep.mubr.msk.f32.mxu0 %vm796_vm1, %v3387_v12  ;;  %3030 = vmatpush3.bf16.msra.mxu0 %v3027_v29 }
 0x1fa   : > { %v2521_v34 = vadd.f32 %v2520_v58, %v2519_v26  ;;  %v957_v4 = vpop.permute.xlu1 %956  ;;  %3046 = vmatpush3.bf16.msra.mxu1 %v3027_v29 }
 0x1fb   : > { %vm987_vm3 = vcmp.eq.s32.totalorder %v3647_v9, %v957_v4 }
 0x1fc   : > { %2440 = vmatprep.mubr.msk.f32.mxu1 %vm987_vm3, %v3387_v12  ;;  %v1269_v15 = vadd.f32 %v2521_v34, %v4036_v49 }
 0x1fd   : > { %v2599_v0 = vpop.f32.mrb[16].mxu1 }
 0x1fe   : > { %v2600_v25 = vpop.f32.mrb[17].mxu1 }
 0x1ff   : > { %v2601_v2 = vadd.f32 %v2600_v25, %v2599_v0  ;;  %v861_v36 = vpop.permute.xlu1 %860 }
 0x200   : > { %vm891_vm4 = vcmp.eq.s32.totalorder %v3647_v9, %v861_v36  ;;  %v687_v36 = vpop.permute.xlu0 %686 }
 0x201   : > { %v4162_v51 = vadd.f32 %v2601_v2, %v1269_v15  ;;  %2441 = vmatmul.mubr.msk.f32.gmra.mrb[48].mxu1 %vm891_vm4, %v3387_v12  ;;  %vm895_vm4 = vcmp.eq.s32.totalorder %v3647_v9, %v4058_v5 }
 0x203   : > { %v2522_v28 = vpop.f32.mrb[18].mxu0 }
 0x204   : > { %v672_v39 = vpop.permute.xlu1 %671  ;;  %v2523_v19 = vpop.f32.mrb[19].mxu0 }
 0x205   : > { %vm700_vm5 = vcmp.eq.s32.totalorder %v3647_v9, %v672_v39  ;;  %v2524_v41 = vadd.f32 %v2523_v19, %v2522_v28 }
 0x206   : > { %2411 = vmatmul.mubr.msk.f32.gmra.mrb[50].mxu0 %vm700_vm5, %v3387_v12 }
 0x207   : > { %v1274_v37 = vadd.f32 %v2524_v41, %v4036_v49 }
 0x209   : > { %v960_v31 = vpop.permute.xlu1 %959 }
 0x20a   : > { %vm988_vm7 = vcmp.eq.s32.totalorder %v3647_v9, %v960_v31  ;;  %v786_v31 = vpop.permute.xlu0 %785 }
 0x20b   : > { %2442 = vmatprep.mubr.msk.f32.mxu1 %vm988_vm7, %v3387_v12 }
 0x20c   : > { %v2602_v44 = vpop.f32.mrb[18].mxu1  ;;  %2443 = vmatmul.mubr.msk.f32.gmra.mrb[50].mxu1 %vm892_vm6, %v3387_v12 }
 0x20d   : > { %v2603_v45 = vpop.f32.mrb[19].mxu1  ;;  %2444 = vmatprep.mubr.msk.f32.mxu1 %vm989_vm8, %v3387_v12  ;;  %vm705_vm8 = vcmp.eq.s32.totalorder %v3647_v9, %v687_v36 }
 0x20e   : > { %v2604_v6 = vadd.f32 %v2603_v45, %v2602_v44  ;;  %v771_v30 = vpop.permute.xlu1 %770  ;;  %v882_v16 = vpop.permute.xlu0 %881 }
 0x20f   : > { %vm797_vm9 = vcmp.eq.s32.totalorder %v3647_v9, %v771_v30 }
 0x210   : > { %v4176_v13 = vadd.f32 %v2604_v6, %v1274_v37  ;;  %2412 = vmatprep.mubr.msk.f32.mxu0 %vm797_vm9, %v3387_v12 }
 0x211   : > { %v2525_v43 = vpop.f32.mrb[20].mxu0 }
 0x212   : > { %v2526_v46 = vpop.f32.mrb[21].mxu0 }
 0x213   : > { %v2527_v17 = vadd.f32 %v2526_v46, %v2525_v43  ;;  %v675_v3 = vpop.permute.xlu1 %674 }
 0x214   : > { %vm701_vm10 = vcmp.eq.s32.totalorder %v3647_v9, %v675_v3 }
 0x215   : > { %2413 = vmatmul.mubr.msk.f32.gmra.mrb[52].mxu0 %vm701_vm10, %v3387_v12  ;;  %v1279_v27 = vadd.f32 %v2527_v17, %v4036_v49  ;;  %vm802_vm10 = vcmp.eq.s32.totalorder %v3647_v9, %v786_v31 }
 0x217   : > { %v2605_v52 = vpop.f32.mrb[20].mxu1 }
 0x218   : > { %v867_v21 = vpop.permute.xlu1 %866  ;;  %v2606_v53 = vpop.f32.mrb[21].mxu1 }
 0x219   : > { %vm893_vm11 = vcmp.eq.s32.totalorder %v3647_v9, %v867_v21  ;;  %v2607_v62 = vadd.f32 %v2606_v53, %v2605_v52 }
 0x21a   : > { %2445 = vmatmul.mubr.msk.f32.gmra.mrb[52].mxu1 %vm893_vm11, %v3387_v12 }
 0x21b   : > { %v4184_v33 = vadd.f32 %v2607_v62, %v1279_v27 }
 0x21d   : > { %v774_v50 = vpop.permute.xlu1 %773 }
 0x21e   : > { %vm798_vm13 = vcmp.eq.s32.totalorder %v3647_v9, %v774_v50 }
 0x21f   : > { %2414 = vmatprep.mubr.msk.f32.mxu0 %vm798_vm13, %v3387_v12 }
 0x220   : > { %v2528_v1 = vpop.f32.mrb[22].mxu0  ;;  %2415 = vmatmul.mubr.msk.f32.gmra.mrb[54].mxu0 %vm702_vm12, %v3387_v12 }
 0x221   : > { %v2529_v54 = vpop.f32.mrb[23].mxu0  ;;  %2416 = vmatprep.mubr.msk.f32.mxu0 %vm799_vm14, %v3387_v12  ;;  %vm898_vm14 = vcmp.eq.s32.totalorder %v3647_v9, %v882_v16 }
 0x222   : > { %v2530_v48 = vadd.f32 %v2529_v54, %v2528_v1  ;;  %v966_v56 = vpop.permute.xlu1 %965 }
 0x223   : > { %vm990_vm15 = vcmp.eq.s32.totalorder %v3647_v9, %v966_v56 }
 0x224   : > { %2446 = vmatprep.mubr.msk.f32.mxu1 %vm990_vm15, %v3387_v12  ;;  %v1284_v10 = vadd.f32 %v2530_v48, %v4036_v49 }
 0x225   : > { %v2608_v57 = vpop.f32.mrb[22].mxu1 }
 0x226   : > { %v2609_v35 = vpop.f32.mrb[23].mxu1 }
 0x227   : > { %v2610_v11 = vadd.f32 %v2609_v35, %v2608_v57  ;;  %v870_v22 = vpop.permute.xlu1 %869 }
 0x228   : > { %vm894_vm0 = vcmp.eq.s32.totalorder %v3647_v9, %v870_v22 }
 0x229   : > { %v4197_v8 = vadd.f32 %v2610_v11, %v1284_v10  ;;  %2447 = vmatmul.mubr.msk.f32.gmra.mrb[54].mxu1 %vm894_vm0, %v3387_v12 }
 0x22b   : > { %v2531_v60 = vpop.f32.mrb[24].mxu0 }
 0x22c   : > { %v681_v32 = vpop.permute.xlu1 %680  ;;  %v2532_v40 = vpop.f32.mrb[25].mxu0 }
 0x22d   : > { %vm703_vm1 = vcmp.eq.s32.totalorder %v3647_v9, %v681_v32  ;;  %v2533_v63 = vadd.f32 %v2532_v40, %v2531_v60 }
 0x22e   : > { %2417 = vmatmul.mubr.msk.f32.gmra.mrb[56].mxu0 %vm703_vm1, %v3387_v12 }
 0x22f   : > { %v1289_v59 = vadd.f32 %v2533_v63, %v4036_v49 }
 0x231   : > { %v969_v23 = vpop.permute.xlu1 %968 }
 0x232   : > { %vm991_vm3 = vcmp.eq.s32.totalorder %v3647_v9, %v969_v23 }
 0x233   : > { %2448 = vmatprep.mubr.msk.f32.mxu1 %vm991_vm3, %v3387_v12 }
 0x234   : > { %v2611_v26 = vpop.f32.mrb[24].mxu1  ;;  %2449 = vmatmul.mubr.msk.f32.gmra.mrb[56].mxu1 %vm895_vm4, %v3387_v12 }
 0x235   : > { %v2612_v29 = vpop.f32.mrb[25].mxu1  ;;  %2450 = vmatprep.mubr.msk.f32.mxu1 %vm992_vm2, %v3387_v12 }
 0x236   : > { %v2613_v58 = vadd.f32 %v2612_v29, %v2611_v26  ;;  %v780_v34 = vpop.permute.xlu1 %779 }
 0x237   : > { %vm800_vm5 = vcmp.eq.s32.totalorder %v3647_v9, %v780_v34 }
 0x238   : > { %v4211_v4 = vadd.f32 %v2613_v58, %v1289_v59  ;;  %2418 = vmatprep.mubr.msk.f32.mxu0 %vm800_vm5, %v3387_v12 }
 0x239   : > { %v2534_v0 = vpop.f32.mrb[26].mxu0 }
 0x23a   : > { %v2535_v5 = vpop.f32.mrb[27].mxu0 }
 0x23b   : > { %v2536_v25 = vadd.f32 %v2535_v5, %v2534_v0  ;;  %v684_v15 = vpop.permute.xlu1 %683 }
 0x23c   : > { %vm704_vm6 = vcmp.eq.s32.totalorder %v3647_v9, %v684_v15 }
 0x23d   : > { %2419 = vmatmul.mubr.msk.f32.gmra.mrb[58].mxu0 %vm704_vm6, %v3387_v12  ;;  %v1294_v19 = vadd.f32 %v2536_v25, %v4036_v49 }
 0x23f   : > { %v2614_v2 = vpop.f32.mrb[26].mxu1 }
 0x240   : > { %v876_v28 = vpop.permute.xlu1 %875  ;;  %v2615_v39 = vpop.f32.mrb[27].mxu1 }
 0x241   : > { %vm896_vm7 = vcmp.eq.s32.totalorder %v3647_v9, %v876_v28  ;;  %v2616_v41 = vadd.f32 %v2615_v39, %v2614_v2 }
 0x242   : > { %2451 = vmatmul.mubr.msk.f32.gmra.mrb[58].mxu1 %vm896_vm7, %v3387_v12 }
 0x243   : > { %v4219_v42 = vadd.f32 %v2616_v41, %v1294_v19 }
 0x245   : > { %v783_v37 = vpop.permute.xlu1 %782 }
 0x246   : > { %vm801_vm9 = vcmp.eq.s32.totalorder %v3647_v9, %v783_v37 }
 0x247   : > { %2420 = vmatprep.mubr.msk.f32.mxu0 %vm801_vm9, %v3387_v12 }
 0x248   : > { %v2537_v44 = vpop.f32.mrb[28].mxu0  ;;  %2421 = vmatmul.mubr.msk.f32.gmra.mrb[60].mxu0 %vm705_vm8, %v3387_v12 }
 0x249   : > { %v2538_v45 = vpop.f32.mrb[29].mxu0  ;;  %2422 = vmatprep.mubr.msk.f32.mxu0 %vm802_vm10, %v3387_v12 }
 0x24a   : > { %v2539_v6 = vadd.f32 %v2538_v45, %v2537_v44  ;;  %v975_v30 = vpop.permute.xlu1 %974 }
 0x24b   : > { %vm993_vm11 = vcmp.eq.s32.totalorder %v3647_v9, %v975_v30 }
 0x24c   : > { %2452 = vmatprep.mubr.msk.f32.mxu1 %vm993_vm11, %v3387_v12  ;;  %v1299_v17 = vadd.f32 %v2539_v6, %v4036_v49 }
 0x24d   : > { %v2617_v43 = vpop.f32.mrb[28].mxu1 }
 0x24e   : > { %v2618_v46 = vpop.f32.mrb[29].mxu1 }
 0x24f   : > { %v2619_v3 = vadd.f32 %v2618_v46, %v2617_v43  ;;  %v879_v7 = vpop.permute.xlu1 %878 }
 0x250   : > { %vm897_vm12 = vcmp.eq.s32.totalorder %v3647_v9, %v879_v7 }
 0x251   : > { %v4231_v52 = vadd.f32 %v2619_v3, %v1299_v17  ;;  %2453 = vmatmul.mubr.msk.f32.gmra.mrb[60].mxu1 %vm897_vm12, %v3387_v12 }
 0x253   : > { %v2540_v21 = vpop.f32.mrb[30].mxu0 }
 0x254   : > { %v690_v53 = vpop.permute.xlu1 %689  ;;  %v2541_v27 = vpop.f32.mrb[31].mxu0 }
 0x255   : > { %vm706_vm13 = vcmp.eq.s32.totalorder %v3647_v9, %v690_v53  ;;  %v2542_v62 = vadd.f32 %v2541_v27, %v2540_v21 }
 0x256   : > { %2423 = vmatmul.mubr.msk.f32.gmra.mrb[62].mxu0 %vm706_vm13, %v3387_v12 }
 0x257   : > { %v1304_v1 = vadd.f32 %v2542_v62, %v4036_v49 }
 0x259   : > { %v978_v50 = vpop.permute.xlu1 %977 }
 0x25a   : > { %vm994_vm15 = vcmp.eq.s32.totalorder %v3647_v9, %v978_v50 }
 0x25b   : > { %2454 = vmatprep.mubr.msk.f32.mxu1 %vm994_vm15, %v3387_v12 }
 0x25c   : > { %v2620_v54 = vpop.f32.mrb[30].mxu1  ;;  %2455 = vmatmul.mubr.msk.f32.gmra.mrb[62].mxu1 %vm898_vm14, %v3387_v12 }
 0x25d   : > { %v2621_v48 = vpop.f32.mrb[31].mxu1 }
 0x25e   : > { %v2622_v56 = vadd.f32 %v2621_v48, %v2620_v54 }
 0x260   : > { %v4241_v57 = vadd.f32 %v2622_v56, %v1304_v1 }
 0x261   : > { %v2655_v35 = vpop.f32.mrb[32].mxu0 }
 0x262   : > { %v2656_v10 = vpop.f32.mrb[33].mxu0 }
 0x263   : > { %v2657_v11 = vadd.f32 %v2656_v10, %v2655_v35 }
 0x265   : > { %v1519_v22 = vadd.f32 %v2657_v11, %v4050_v38 }
 0x267   : > { %v2735_v60 = vpop.f32.mrb[32].mxu1 }
 0x268   : > { %v2736_v32 = vpop.f32.mrb[33].mxu1 }
 0x269   : > { %v2737_v40 = vadd.f32 %v2736_v32, %v2735_v60 }
 0x26b   : > { %v1664_v9 = vadd.f32 %v2737_v40, %v1519_v22 }
 0x26d   : > { %v1742_v63 = vmax.f32 %v1664_v9, 0.0 }
 0x26f   : > { %2847 = vmatprep.mubr.f32.mxu0 %v1742_v63 }
 0x270   : > { %v2658_v23 = vpop.f32.mrb[34].mxu0 }
 0x271   : > { %v2659_v49 = vpop.f32.mrb[35].mxu0 }
 0x272   : > { %v2660_v59 = vadd.f32 %v2659_v49, %v2658_v23 }
 0x274   : > { %v1524_v12 = vadd.f32 %v2660_v59, %v4131_v61 }
 0x275   : > { %v2738_v26 = vpop.f32.mrb[34].mxu1 }
 0x276   : > { %v2739_v29 = vpop.f32.mrb[35].mxu1 }
 0x277   : > { %v2740_v58 = vadd.f32 %v2739_v29, %v2738_v26 }
 0x279   : > { %v1669_v34 = vadd.f32 %v2740_v58, %v1524_v12 }
 0x27b   : > { %v1743_v0 = vmax.f32 %v1669_v34, 0.0  ;;  %v2661_v5 = vpop.f32.mrb[36].mxu0 }
 0x27c   : > { %v2662_v25 = vpop.f32.mrb[37].mxu0 }
 0x27d   : > { %v2663_v15 = vadd.f32 %v2662_v25, %v2661_v5  ;;  %2848 = vmatmul.mubr.f32.vlgmr.msra.gmra.mrb[64].mxu0 %v1743_v0 }
 0x27f   : > { %v1529_v38 = vadd.f32 %v2663_v15, %v4068_v20 }
 0x284   : > { %v2741_v2 = vpop.f32.mrb[36].mxu1 }
 0x285   : > { %v2742_v36 = vpop.f32.mrb[37].mxu1 }
 0x286   : > { %v2743_v28 = vadd.f32 %v2742_v36, %v2741_v2 }
 0x288   : > { %v1674_v39 = vadd.f32 %v2743_v28, %v1529_v38 }
 0x289   : > { %v2664_v19 = vpop.f32.mrb[38].mxu0 }
 0x28a   : > { %v1744_v41 = vmax.f32 %v1674_v39, 0.0  ;;  %v2665_v31 = vpop.f32.mrb[39].mxu0 }
 0x28b   : > { %v2666_v37 = vadd.f32 %v2665_v31, %v2664_v19 }
 0x28c   : > { %2850 = vmatprep.mubr.f32.mxu0 %v1744_v41 }
 0x28d   : > { %v1534_v61 = vadd.f32 %v2666_v37, %v4080_v24 }
 0x28f   : > { %v2744_v44 = vpop.f32.mrb[38].mxu1 }
 0x290   : > { %v2745_v45 = vpop.f32.mrb[39].mxu1 }
 0x291   : > { %v2746_v6 = vadd.f32 %v2745_v45, %v2744_v44 }
 0x293   : > { %v1679_v30 = vadd.f32 %v2746_v6, %v1534_v61 }
 0x295   : > { %v1745_v43 = vmax.f32 %v1679_v30, 0.0 }
 0x297   : > { %2851 = vmatmul.mubr.f32.gmra.mrb[66].mxu0 %v1745_v43 }
 0x298   : > { %v2667_v46 = vpop.f32.mrb[40].mxu0 }
 0x299   : > { %v2668_v17 = vpop.f32.mrb[41].mxu0 }
 0x29a   : > { %v2669_v20 = vadd.f32 %v2668_v17, %v2667_v46 }
 0x29c   : > { %v1539_v3 = vadd.f32 %v2669_v20, %v4096_v18 }
 0x29d   : > { %v2747_v7 = vpop.f32.mrb[40].mxu1 }
 0x29e   : > { %v2748_v21 = vpop.f32.mrb[41].mxu1 }
 0x29f   : > { %v2749_v53 = vadd.f32 %v2748_v21, %v2747_v7 }
 0x2a1   : > { %v1684_v27 = vadd.f32 %v2749_v53, %v1539_v3 }
 0x2a3   : > { %v1746_v62 = vmax.f32 %v1684_v27, 0.0  ;;  %v2670_v16 = vpop.f32.mrb[42].mxu0 }
 0x2a4   : > { %v2671_v50 = vpop.f32.mrb[43].mxu0 }
 0x2a5   : > { %v2672_v1 = vadd.f32 %v2671_v50, %v2670_v16  ;;  %2853 = vmatprep.mubr.f32.mxu0 %v1746_v62 }
 0x2a7   : > { %v1544_v24 = vadd.f32 %v2672_v1, %v4109_v47 }
 0x2ac   : > { %v2750_v54 = vpop.f32.mrb[42].mxu1 }
 0x2ad   : > { %v2751_v48 = vpop.f32.mrb[43].mxu1 }
 0x2ae   : > { %v2752_v56 = vadd.f32 %v2751_v48, %v2750_v54 }
 0x2b0   : > { %v1689_v35 = vadd.f32 %v2752_v56, %v1544_v24 }
 0x2b1   : > { %v2673_v10 = vpop.f32.mrb[44].mxu0 }
 0x2b2   : > { %v1747_v11 = vmax.f32 %v1689_v35, 0.0  ;;  %v2674_v22 = vpop.f32.mrb[45].mxu0 }
 0x2b3   : > { %v2675_v60 = vadd.f32 %v2674_v22, %v2673_v10 }
 0x2b4   : > { %2854 = vmatmul.mubr.f32.gmra.mrb[68].mxu0 %v1747_v11 }
 0x2b5   : > { %v1549_v18 = vadd.f32 %v2675_v60, %v4121_v55 }
 0x2b7   : > { %v2753_v32 = vpop.f32.mrb[44].mxu1 }
 0x2b8   : > { %v2754_v40 = vpop.f32.mrb[45].mxu1 }
 0x2b9   : > { %v2755_v9 = vadd.f32 %v2754_v40, %v2753_v32 }
 0x2bb   : > { %v1694_v63 = vadd.f32 %v2755_v9, %v1549_v18 }
 0x2bd   : > { %v1748_v23 = vmax.f32 %v1694_v63, 0.0 }
 0x2bf   : > { %2856 = vmatprep.mubr.f32.mxu0 %v1748_v23 }
 0x2c0   : > { %v2676_v49 = vpop.f32.mrb[46].mxu0 }
 0x2c1   : > { %v2677_v59 = vpop.f32.mrb[47].mxu0 }
 0x2c2   : > { %v2678_v47 = vadd.f32 %v2677_v59, %v2676_v49 }
 0x2c4   : > { %v1554_v12 = vadd.f32 %v2678_v47, %v4136_v14 }
 0x2c5   : > { %v2756_v26 = vpop.f32.mrb[46].mxu1 }
 0x2c6   : > { %v2757_v29 = vpop.f32.mrb[47].mxu1 }
 0x2c7   : > { %v2758_v58 = vadd.f32 %v2757_v29, %v2756_v26 }
 0x2c9   : > { %v1699_v34 = vadd.f32 %v2758_v58, %v1554_v12 }
 0x2cb   : > { %v1749_v0 = vmax.f32 %v1699_v34, 0.0  ;;  %v2679_v5 = vpop.f32.mrb[48].mxu0 }
 0x2cc   : > { %v2680_v25 = vpop.f32.mrb[49].mxu0 }
 0x2cd   : > { %v2681_v15 = vadd.f32 %v2680_v25, %v2679_v5  ;;  %2857 = vmatmul.mubr.f32.gmra.mrb[70].mxu0 %v1749_v0 }
 0x2cf   : > { %v1559_v55 = vadd.f32 %v2681_v15, %v4162_v51 }
 0x2d4   : > { %v2759_v38 = vpop.f32.mrb[48].mxu1 }
 0x2d5   : > { %v2760_v2 = vpop.f32.mrb[49].mxu1 }
 0x2d6   : > { %v2761_v36 = vadd.f32 %v2760_v2, %v2759_v38 }
 0x2d8   : > { %v1704_v28 = vadd.f32 %v2761_v36, %v1559_v55 }
 0x2d9   : > { %v2682_v39 = vpop.f32.mrb[50].mxu0 }
 0x2da   : > { %v1750_v19 = vmax.f32 %v1704_v28, 0.0  ;;  %v2683_v41 = vpop.f32.mrb[51].mxu0 }
 0x2db   : > { %v2684_v31 = vadd.f32 %v2683_v41, %v2682_v39 }
 0x2dc   : > { %2859 = vmatprep.mubr.f32.mxu1 %v1750_v19 }
 0x2dd   : > { %v1564_v14 = vadd.f32 %v2684_v31, %v4176_v13 }
 0x2df   : > { %v2762_v37 = vpop.f32.mrb[50].mxu1 }
 0x2e0   : > { %v2763_v61 = vpop.f32.mrb[51].mxu1 }
 0x2e1   : > { %v2764_v44 = vadd.f32 %v2763_v61, %v2762_v37 }
 0x2e3   : > { %v1709_v45 = vadd.f32 %v2764_v44, %v1564_v14 }
 0x2e5   : > { %v1751_v6 = vmax.f32 %v1709_v45, 0.0 }
 0x2e7   : > { %2860 = vmatmul.mubr.f32.vlgmr.msra.gmra.mrb[64].mxu1 %v1751_v6 }
 0x2e8   : > { %v2685_v30 = vpop.f32.mrb[52].mxu0 }
 0x2e9   : > { %v2686_v43 = vpop.f32.mrb[53].mxu0 }
 0x2ea   : > { %v2687_v51 = vadd.f32 %v2686_v43, %v2685_v30 }
 0x2ec   : > { %v1569_v46 = vadd.f32 %v2687_v51, %v4184_v33 }
 0x2ed   : > { %v2765_v17 = vpop.f32.mrb[52].mxu1 }
 0x2ee   : > { %v2766_v20 = vpop.f32.mrb[53].mxu1 }
 0x2ef   : > { %v2767_v3 = vadd.f32 %v2766_v20, %v2765_v17 }
 0x2f1   : > { %v1714_v7 = vadd.f32 %v2767_v3, %v1569_v46 }
 0x2f3   : > { %v1752_v21 = vmax.f32 %v1714_v7, 0.0  ;;  %v2688_v53 = vpop.f32.mrb[54].mxu0 }
 0x2f4   : > { %v2689_v27 = vpop.f32.mrb[55].mxu0 }
 0x2f5   : > { %v2690_v62 = vadd.f32 %v2689_v27, %v2688_v53  ;;  %2862 = vmatprep.mubr.f32.mxu1 %v1752_v21 }
 0x2f7   : > { %v1574_v13 = vadd.f32 %v2690_v62, %v4197_v8 }
 0x2fc   : > { %v2768_v16 = vpop.f32.mrb[54].mxu1 }
 0x2fd   : > { %v2769_v50 = vpop.f32.mrb[55].mxu1 }
 0x2fe   : > { %v2770_v1 = vadd.f32 %v2769_v50, %v2768_v16 }
 0x300   : > { %v1719_v24 = vadd.f32 %v2770_v1, %v1574_v13 }
 0x301   : > { %v2691_v54 = vpop.f32.mrb[56].mxu0 }
 0x302   : > { %v1753_v48 = vmax.f32 %v1719_v24, 0.0  ;;  %v2692_v56 = vpop.f32.mrb[57].mxu0 }
 0x303   : > { %v2693_v35 = vadd.f32 %v2692_v56, %v2691_v54 }
 0x304   : > { %2863 = vmatmul.mubr.f32.gmra.mrb[66].mxu1 %v1753_v48 }
 0x305   : > { %v1579_v33 = vadd.f32 %v2693_v35, %v4211_v4 }
 0x307   : > { %v2771_v10 = vpop.f32.mrb[56].mxu1 }
 0x308   : > { %v2772_v11 = vpop.f32.mrb[57].mxu1 }
 0x309   : > { %v2773_v22 = vadd.f32 %v2772_v11, %v2771_v10 }
 0x30b   : > { %v1724_v60 = vadd.f32 %v2773_v22, %v1579_v33 }
 0x30d   : > { %v1754_v18 = vmax.f32 %v1724_v60, 0.0 }
 0x30f   : > { %2865 = vmatprep.mubr.f32.mxu1 %v1754_v18 }
 0x310   : > { %v2694_v32 = vpop.f32.mrb[58].mxu0 }
 0x311   : > { %v2695_v40 = vpop.f32.mrb[59].mxu0 }
 0x312   : > { %v2696_v8 = vadd.f32 %v2695_v40, %v2694_v32 }
 0x314   : > { %v1584_v9 = vadd.f32 %v2696_v8, %v4219_v42 }
 0x315   : > { %v2774_v63 = vpop.f32.mrb[58].mxu1 }
 0x316   : > { %v2775_v23 = vpop.f32.mrb[59].mxu1 }
 0x317   : > { %v2776_v49 = vadd.f32 %v2775_v23, %v2774_v63 }
 0x319   : > { %v1729_v59 = vadd.f32 %v2776_v49, %v1584_v9 }
 0x31b   : > { %v1755_v47 = vmax.f32 %v1729_v59, 0.0  ;;  %v2697_v12 = vpop.f32.mrb[60].mxu0 }
 0x31c   : > { %v2698_v26 = vpop.f32.mrb[61].mxu0 }
 0x31d   : > { %v2699_v29 = vadd.f32 %v2698_v26, %v2697_v12  ;;  %2866 = vmatmul.mubr.f32.gmra.mrb[68].mxu1 %v1755_v47 }
 0x31f   : > { %v1589_v4 = vadd.f32 %v2699_v29, %v4231_v52  ;;  %v2456_v52 = vld [vmem:[%s4443_s4] ss:$0 sm:$0xff] }
 0x324   : > { %v2777_v58 = vpop.f32.mrb[60].mxu1 }
 0x325   : > { %v2778_v34 = vpop.f32.mrb[61].mxu1 }
 0x326   : > { %v2779_v0 = vadd.f32 %v2778_v34, %v2777_v58 }
 0x328   : > { %v1734_v5 = vadd.f32 %v2779_v0, %v1589_v4 }
 0x329   : > { %v2700_v25 = vpop.f32.mrb[62].mxu0 }
 0x32a   : > { %v1756_v15 = vmax.f32 %v1734_v5, 0.0  ;;  %v2701_v55 = vpop.f32.mrb[63].mxu0 }
 0x32b   : > { %v2702_v38 = vadd.f32 %v2701_v55, %v2700_v25 }
 0x32c   : > { %2868 = vmatprep.mubr.f32.mxu1 %v1756_v15 }
 0x32d   : > { %v1594_v42 = vadd.f32 %v2702_v38, %v4241_v57 }
 0x32f   : > { %v2780_v2 = vpop.f32.mrb[62].mxu1 }
 0x330   : > { %v2781_v36 = vpop.f32.mrb[63].mxu1 }
 0x331   : > { %v2782_v28 = vadd.f32 %v2781_v36, %v2780_v2 }
 0x333   : > { %v1739_v39 = vadd.f32 %v2782_v28, %v1594_v42 }
 0x335   : > { %v1757_v19 = vmax.f32 %v1739_v39, 0.0 }
 0x337   : > { %2869 = vmatmul.mubr.f32.gmra.mrb[70].mxu1 %v1757_v19 }
 0x350   : > { %v2849_v41 = vpop.f32.mrb[64].mxu0 }
 0x351   : > { %v1853_v31 = vadd.f32 %v2849_v41, %v2456_v52  ;;  %v1847_v14 = vpop.f32.mrb[65].mxu0 }
 0x352   : > { %v1848_v37 = vadd.f32 %v2456_v52, %v1847_v14 }
 0x353   : > { %1928 = vmax.xlane.f32.xlu0 %v1853_v31 }
 0x354   : > { %1926 = vmax.xlane.f32.xlu1 %v1848_v37 }
 0x36a   : > { %v2852_v61 = vpop.f32.mrb[66].mxu0 }
 0x36b   : > { %v1863_v44 = vadd.f32 %v2852_v61, %v2456_v52  ;;  %v1857_v45 = vpop.f32.mrb[67].mxu0 }
 0x36c   : > { %v1858_v57 = vadd.f32 %v2456_v52, %v1857_v45 }
 0x36d   : > { %1932 = vmax.xlane.f32.xlu0 %v1863_v44 }
 0x36e   : > { %1930 = vmax.xlane.f32.xlu1 %v1858_v57 }
 0x387   : > { %v2855_v6 = vpop.f32.mrb[68].mxu0 }
 0x388   : > { %v1873_v30 = vadd.f32 %v2855_v6, %v2456_v52  ;;  %v1867_v43 = vpop.f32.mrb[69].mxu0 }
 0x389   : > { %v1868_v51 = vadd.f32 %v2456_v52, %v1867_v43 }
 0x38a   : > { %1936 = vmax.xlane.f32.xlu0 %v1873_v30 }
 0x38b   : > { %1934 = vmax.xlane.f32.xlu1 %v1868_v51 }
 0x3a0   : > { %v2858_v46 = vpop.f32.mrb[70].mxu0 }
 0x3a1   : > { %v4262_v17 = vadd.f32 %v2858_v46, %v2456_v52  ;;  %v1877_v20 = vpop.f32.mrb[71].mxu0 }
 0x3a2   : > { %v4264_v3 = vadd.f32 %v2456_v52, %v1877_v20 }
 0x3a3   : > { %1940 = vmax.xlane.f32.xlu0 %v4262_v17 }
 0x3a4   : > { %1938 = vmax.xlane.f32.xlu1 %v4264_v3 }
 0x3ba   : > { %v2861_v7 = vpop.f32.mrb[64].mxu1 }
 0x3bb   : > { %v4268_v21 = vadd.f32 %v2861_v7, %v2456_v52  ;;  %v1887_v53 = vpop.f32.mrb[65].mxu1 }
 0x3bc   : > { %v4270_v27 = vadd.f32 %v2456_v52, %v1887_v53 }
 0x3bd   : > { %1944 = vmax.xlane.f32.xlu0 %v4268_v21 }
 0x3be   : > { %1942 = vmax.xlane.f32.xlu1 %v4270_v27 }
 0x3d7   : > { %v2864_v62 = vpop.f32.mrb[66].mxu1 }
 0x3d8   : > { %v4274_v13 = vadd.f32 %v2864_v62, %v2456_v52  ;;  %v1897_v16 = vpop.f32.mrb[67].mxu1 }
 0x3d9   : > { %v4276_v50 = vadd.f32 %v2456_v52, %v1897_v16 }
 0x3da   : > { %1948 = vmax.xlane.f32.xlu0 %v4274_v13 }
 0x3db   : > { %1946 = vmax.xlane.f32.xlu1 %v4276_v50 }
 0x3e0   : > { %v1929_v56 = vpop.xlane.xlu0 %1928 }
 0x3e1   : > { %v1927_v35 = vpop.xlane.xlu1 %1926  ;;  %v4286_v33 = vsub.f32 %v1853_v31, %v1929_v56 }
 0x3e2   : > { %v4288_v10 = vsub.f32 %v1848_v37, %v1927_v35 }
 0x3e3   : > { %v1976_v60 = vmul.f32 1.442695, %v4286_v33 }
 0x3e4   : > { %v1974_v32 = vmul.f32 1.442695, %v4288_v10 }
 0x3e5   : > { %3207 = vpow2.f32 %v1976_v60 }
 0x3e6   : > { %3209 = vpow2.f32 %v1974_v32 }
 0x3ef   : > { %v3208_v47 = vpop.eup %3207 }
 0x3f0   : > { %v2867_v1 = vpop.f32.mrb[68].mxu1  ;;  %v3210_v12 = vpop.eup %3209 }
 0x3f1   : > { %v4280_v24 = vadd.f32 %v2867_v1, %v2456_v52  ;;  %v1907_v54 = vpop.f32.mrb[69].mxu1 }
 0x3f2   : > { %v4282_v48 = vadd.f32 %v2456_v52, %v1907_v54 }
 0x3f3   : > { %1952 = vmax.xlane.f32.xlu0 %v4280_v24 }
 0x3f4   : > { %1950 = vmax.xlane.f32.xlu1 %v4282_v48 }
 0x3fa   : > { %v1933_v11 = vpop.xlane.xlu0 %1932 }
 0x3fb   : > { %v1931_v22 = vpop.xlane.xlu1 %1930  ;;  %v4291_v18 = vsub.f32 %v1863_v44, %v1933_v11 }
 0x3fc   : > { %v4294_v40 = vsub.f32 %v1858_v57, %v1931_v22 }
 0x3fd   : > { %v1980_v8 = vmul.f32 1.442695, %v4291_v18 }
 0x3fe   : > { %v1978_v9 = vmul.f32 1.442695, %v4294_v40 }
 0x3ff   : > { %3211 = vpow2.f32 %v1980_v8 }
 0x400   : > { %3213 = vpow2.f32 %v1978_v9 }
 0x409   : > { %v3212_v26 = vpop.eup %3211 }
 0x40a   : > { %v2870_v63 = vpop.f32.mrb[70].mxu1  ;;  %v3214_v29 = vpop.eup %3213 }
 0x40b   : > { %v4298_v23 = vadd.f32 %v2870_v63, %v2456_v52  ;;  %v1917_v49 = vpop.f32.mrb[71].mxu1 }
 0x40c   : > { %v4300_v59 = vadd.f32 %v2456_v52, %v1917_v49 }
 0x40d   : > { %1956 = vmax.xlane.f32.xlu0 %v4298_v23 }
 0x40e   : > { %1954 = vmax.xlane.f32.xlu1 %v4300_v59 }
 0x411   : > { %2008 = vadd.xlane.f32.xlu0 %v3208_v47 }
 0x412   : > { %2006 = vadd.xlane.f32.xlu1 %v3210_v12 }
 0x415   : > { %2012 = vadd.xlane.f32.xlu0 %v3212_v26 }
 0x416   : > { %2010 = vadd.xlane.f32.xlu1 %v3214_v29 }
 0x417   : > { %v1937_v4 = vpop.xlane.xlu0 %1936 }
 0x418   : > { %v4304_v58 = vsub.f32 %v1873_v30, %v1937_v4  ;;  %v1935_v34 = vpop.xlane.xlu1 %1934 }
 0x419   : > { %v4306_v0 = vsub.f32 %v1868_v51, %v1935_v34 }
 0x41a   : > { %v1984_v5 = vmul.f32 1.442695, %v4304_v58 }
 0x41b   : > { %v1982_v25 = vmul.f32 1.442695, %v4306_v0 }
 0x41c   : > { %3215 = vpow2.f32 %v1984_v5 }
 0x41d   : > { %3217 = vpow2.f32 %v1982_v25 }
 0x426   : > { %v3216_v15 = vpop.eup %3215 }
 0x427   : > { %v3218_v55 = vpop.eup %3217  ;;  %2016 = vadd.xlane.f32.xlu0 %v3216_v15 }
 0x428   : > { %2014 = vadd.xlane.f32.xlu1 %v3218_v55 }
 0x430   : > { %v1941_v38 = vpop.xlane.xlu0 %1940 }
 0x431   : > { %v4311_v42 = vsub.f32 %v4262_v17, %v1941_v38  ;;  %v1939_v2 = vpop.xlane.xlu1 %1938 }
 0x432   : > { %v4314_v36 = vsub.f32 %v4264_v3, %v1939_v2 }
 0x433   : > { %v1988_v28 = vmul.f32 1.442695, %v4311_v42 }
 0x434   : > { %v1986_v39 = vmul.f32 1.442695, %v4314_v36 }
 0x435   : > { %3219 = vpow2.f32 %v1988_v28 }
 0x436   : > { %3221 = vpow2.f32 %v1986_v39 }
 0x43f   : > { %v3220_v19 = vpop.eup %3219 }
 0x440   : > { %v3222_v52 = vpop.eup %3221  ;;  %2020 = vadd.xlane.f32.xlu0 %v3220_v19 }
 0x441   : > { %2018 = vadd.xlane.f32.xlu1 %v3222_v52 }
 0x44a   : > { %v1945_v41 = vpop.xlane.xlu0 %1944 }
 0x44b   : > { %v4319_v31 = vsub.f32 %v4268_v21, %v1945_v41  ;;  %v1943_v14 = vpop.xlane.xlu1 %1942 }
 0x44c   : > { %v4322_v37 = vsub.f32 %v4270_v27, %v1943_v14 }
 0x44d   : > { %v1992_v61 = vmul.f32 1.442695, %v4319_v31 }
 0x44e   : > { %v1990_v44 = vmul.f32 1.442695, %v4322_v37 }
 0x44f   : > { %3223 = vpow2.f32 %v1992_v61 }
 0x450   : > { %3225 = vpow2.f32 %v1990_v44 }
 0x459   : > { %v3224_v45 = vpop.eup %3223 }
 0x45a   : > { %v3226_v57 = vpop.eup %3225  ;;  %2024 = vadd.xlane.f32.xlu0 %v3224_v45 }
 0x45b   : > { %2022 = vadd.xlane.f32.xlu1 %v3226_v57 }
 0x467   : > { %v1949_v6 = vpop.xlane.xlu0 %1948 }
 0x468   : > { %v4327_v30 = vsub.f32 %v4274_v13, %v1949_v6  ;;  %v1947_v43 = vpop.xlane.xlu1 %1946 }
 0x469   : > { %v4330_v51 = vsub.f32 %v4276_v50, %v1947_v43 }
 0x46a   : > { %v1996_v46 = vmul.f32 1.442695, %v4327_v30 }
 0x46b   : > { %v1994_v17 = vmul.f32 1.442695, %v4330_v51 }
 0x46c   : > { %3227 = vpow2.f32 %v1996_v46 }
 0x46d   : > { %3229 = vpow2.f32 %v1994_v17 }
 0x476   : > { %v3228_v20 = vpop.eup %3227 }
 0x477   : > { %v3230_v3 = vpop.eup %3229  ;;  %2028 = vadd.xlane.f32.xlu0 %v3228_v20 }
 0x478   : > { %2026 = vadd.xlane.f32.xlu1 %v3230_v3 }
 0x480   : > { %v1953_v7 = vpop.xlane.xlu0 %1952 }
 0x481   : > { %v4335_v21 = vsub.f32 %v4280_v24, %v1953_v7  ;;  %v1951_v53 = vpop.xlane.xlu1 %1950 }
 0x482   : > { %v4338_v27 = vsub.f32 %v4282_v48, %v1951_v53 }
 0x483   : > { %v2000_v62 = vmul.f32 1.442695, %v4335_v21 }
 0x484   : > { %v1998_v13 = vmul.f32 1.442695, %v4338_v27 }
 0x485   : > { %3231 = vpow2.f32 %v2000_v62 }
 0x486   : > { %3233 = vpow2.f32 %v1998_v13 }
 0x48f   : > { %v3232_v16 = vpop.eup %3231 }
 0x490   : > { %v3234_v50 = vpop.eup %3233  ;;  %2032 = vadd.xlane.f32.xlu0 %v3232_v16 }
 0x491   : > { %2030 = vadd.xlane.f32.xlu1 %v3234_v50 }
 0x49a   : > { %v1957_v1 = vpop.xlane.xlu0 %1956 }
 0x49b   : > { %v4343_v54 = vsub.f32 %v4298_v23, %v1957_v1  ;;  %v1955_v24 = vpop.xlane.xlu1 %1954 }
 0x49c   : > { %v4346_v56 = vsub.f32 %v4300_v59, %v1955_v24 }
 0x49d   : > { %v2004_v48 = vmul.f32 1.442695, %v4343_v54 }
 0x49e   : > { %v2002_v35 = vmul.f32 1.442695, %v4346_v56  ;;  %v2009_v11 = vpop.xlane.xlu0 %2008 }
 0x49f   : > { %3235 = vpow2.f32 %v2004_v48  ;;  %v2007_v22 = vpop.xlane.xlu1 %2006 }
 0x4a0   : > { %3237 = vpow2.f32 %v2002_v35 }
 0x4a1   : > { %3239 = vlog2.f32 %v2009_v11 }
 0x4a2   : > { %3241 = vlog2.f32 %v2007_v22  ;;  %v2013_v60 = vpop.xlane.xlu0 %2012 }
 0x4a3   : > { %3243 = vlog2.f32 %v2013_v60  ;;  %v2011_v32 = vpop.xlane.xlu1 %2010 }
 0x4a4   : > { %3245 = vlog2.f32 %v2011_v32 }
 0x4a9   : > { %v3236_v8 = vpop.eup %3235 }
 0x4aa   : > { %v3238_v9 = vpop.eup %3237  ;;  %2036 = vadd.xlane.f32.xlu0 %v3236_v8 }
 0x4ab   : > { %v3240_v63 = vpop.eup %3239  ;;  %2034 = vadd.xlane.f32.xlu1 %v3238_v9 }
 0x4ac   : > { %v3242_v23 = vpop.eup %3241  ;;  %v2041_v49 = vmul.f32 0.6931472, %v3240_v63 }
 0x4ad   : > { %v3244_v59 = vpop.eup %3243  ;;  %v2039_v47 = vmul.f32 0.6931472, %v3242_v23 }
 0x4ae   : > { %v3246_v12 = vpop.eup %3245  ;;  %v2071_v26 = vsub.f32 %v4286_v33, %v2041_v49  ;;  %v2045_v29 = vmul.f32 0.6931472, %v3244_v59 }
 0x4af   : > { %v2070_v4 = vsub.f32 %v4288_v10, %v2039_v47  ;;  %v2043_v34 = vmul.f32 0.6931472, %v3246_v12 }
 0x4b0   : > { %2087 = vst [vmem:[%s4355_s16 + $0x8] sm:$0xff] %v2071_v26  ;;  %v2073_v5 = vsub.f32 %v4291_v18, %v2045_v29 }
 0x4b1   : > { %2086 = vst [vmem:[%s4355_s16] sm:$0xff] %v2070_v4  ;;  %v2072_v25 = vsub.f32 %v4294_v40, %v2043_v34 }
 0x4b2   : > { %2089 = vst [vmem:[%s4355_s16 + $0x18] sm:$0xff] %v2073_v5 }
 0x4b3   : > { %2088 = vst [vmem:[%s4355_s16 + $0x10] sm:$0xff] %v2072_v25 }
 0x4b4   : > { %v2017_v33 = vpop.xlane.xlu0 %2016 }
 0x4b5   : > { %3247 = vlog2.f32 %v2017_v33  ;;  %v2015_v10 = vpop.xlane.xlu1 %2014 }
 0x4b6   : > { %3249 = vlog2.f32 %v2015_v10 }
 0x4bf   : > { %v3248_v15 = vpop.eup %3247 }
 0x4c0   : > { %v3250_v55 = vpop.eup %3249  ;;  %v2049_v38 = vmul.f32 0.6931472, %v3248_v15 }
 0x4c1   : > { %v2047_v2 = vmul.f32 0.6931472, %v3250_v55 }
 0x4c2   : > { %v2075_v28 = vsub.f32 %v4304_v58, %v2049_v38 }
 0x4c3   : > { %v2074_v18 = vsub.f32 %v4306_v0, %v2047_v2 }
 0x4c4   : > { %2091 = vst [vmem:[%s4355_s16 + $0x28] sm:$0xff] %v2075_v28 }
 0x4c5   : > { %2090 = vst [vmem:[%s4355_s16 + $0x20] sm:$0xff] %v2074_v18 }
 0x4cd   : > { %v2021_v39 = vpop.xlane.xlu0 %2020 }
 0x4ce   : > { %3251 = vlog2.f32 %v2021_v39  ;;  %v2019_v40 = vpop.xlane.xlu1 %2018 }
 0x4cf   : > { %3253 = vlog2.f32 %v2019_v40 }
 0x4d8   : > { %v3252_v19 = vpop.eup %3251 }
 0x4d9   : > { %v3254_v52 = vpop.eup %3253  ;;  %v2053_v41 = vmul.f32 0.6931472, %v3252_v19 }
 0x4da   : > { %v2051_v14 = vmul.f32 0.6931472, %v3254_v52 }
 0x4db   : > { %v2077_v61 = vsub.f32 %v4311_v42, %v2053_v41 }
 0x4dc   : > { %v2076_v44 = vsub.f32 %v4314_v36, %v2051_v14 }
 0x4dd   : > { %2093 = vst [vmem:[%s4355_s16 + $0x38] sm:$0xff] %v2077_v61 }
 0x4de   : > { %2092 = vst [vmem:[%s4355_s16 + $0x30] sm:$0xff] %v2076_v44 }
 0x4e7   : > { %v2025_v58 = vpop.xlane.xlu0 %2024 }
 0x4e8   : > { %3255 = vlog2.f32 %v2025_v58  ;;  %v2023_v0 = vpop.xlane.xlu1 %2022 }
 0x4e9   : > { %3257 = vlog2.f32 %v2023_v0 }
 0x4f2   : > { %v3256_v45 = vpop.eup %3255 }
 0x4f3   : > { %v3258_v57 = vpop.eup %3257  ;;  %v2057_v6 = vmul.f32 0.6931472, %v3256_v45 }
 0x4f4   : > { %v2055_v43 = vmul.f32 0.6931472, %v3258_v57 }
 0x4f5   : > { %v2079_v46 = vsub.f32 %v4319_v31, %v2057_v6 }
 0x4f6   : > { %v2078_v17 = vsub.f32 %v4322_v37, %v2055_v43 }
 0x4f7   : > { %2095 = vst [vmem:[%s4355_s16 + $0x48] sm:$0xff] %v2079_v46 }
 0x4f8   : > { %2094 = vst [vmem:[%s4355_s16 + $0x40] sm:$0xff] %v2078_v17 }
 0x504   : > { %v2029_v42 = vpop.xlane.xlu0 %2028 }
 0x505   : > { %3259 = vlog2.f32 %v2029_v42  ;;  %v2027_v36 = vpop.xlane.xlu1 %2026 }
 0x506   : > { %3261 = vlog2.f32 %v2027_v36 }
 0x50f   : > { %v3260_v20 = vpop.eup %3259 }
 0x510   : > { %v3262_v3 = vpop.eup %3261  ;;  %v2061_v7 = vmul.f32 0.6931472, %v3260_v20 }
 0x511   : > { %v2059_v53 = vmul.f32 0.6931472, %v3262_v3 }
 0x512   : > { %v2081_v62 = vsub.f32 %v4327_v30, %v2061_v7 }
 0x513   : > { %v2080_v13 = vsub.f32 %v4330_v51, %v2059_v53 }
 0x514   : > { %2097 = vst [vmem:[%s4355_s16 + $0x58] sm:$0xff] %v2081_v62 }
 0x515   : > { %2096 = vst [vmem:[%s4355_s16 + $0x50] sm:$0xff] %v2080_v13 }
 0x51d   : > { %v2033_v31 = vpop.xlane.xlu0 %2032 }
 0x51e   : > { %3263 = vlog2.f32 %v2033_v31  ;;  %v2031_v37 = vpop.xlane.xlu1 %2030 }
 0x51f   : > { %3265 = vlog2.f32 %v2031_v37 }
 0x528   : > { %v3264_v16 = vpop.eup %3263 }
 0x529   : > { %v3266_v50 = vpop.eup %3265  ;;  %v2065_v1 = vmul.f32 0.6931472, %v3264_v16 }
 0x52a   : > { %v2063_v24 = vmul.f32 0.6931472, %v3266_v50 }
 0x52b   : > { %v2083_v48 = vsub.f32 %v4335_v21, %v2065_v1 }
 0x52c   : > { %v2082_v35 = vsub.f32 %v4338_v27, %v2063_v24 }
 0x52d   : > { %2099 = vst [vmem:[%s4355_s16 + $0x68] sm:$0xff] %v2083_v48 }
 0x52e   : > { %2098 = vst [vmem:[%s4355_s16 + $0x60] sm:$0xff] %v2082_v35 }
 0x537   : > { %v2037_v30 = vpop.xlane.xlu0 %2036 }
 0x538   : > { %3267 = vlog2.f32 %v2037_v30  ;;  %v2035_v51 = vpop.xlane.xlu1 %2034 }
 0x539   : > { %3269 = vlog2.f32 %v2035_v51 }
 0x542   : > { %v3268_v11 = vpop.eup %3267 }
 0x543   : > { %v3270_v22 = vpop.eup %3269  ;;  %v2069_v60 = vmul.f32 0.6931472, %v3268_v11 }
 0x544   : > { %v2067_v32 = vmul.f32 0.6931472, %v3270_v22 }
 0x545   : > { %v2085_v21 = vsub.f32 %v4343_v54, %v2069_v60 }
 0x546   : > { %v2084_v27 = vsub.f32 %v4346_v56, %v2067_v32 }
 0x547   : > { %2101 = vst [vmem:[%s4355_s16 + $0x78] sm:$0xff] %v2085_v21 }
 0x548   : > { %2100 = vst [vmem:[%s4355_s16 + $0x70] sm:$0xff] %v2084_v27 }
 0x549   : > { %3322 = shalt.err (!%p3319_p7)
}
 0x54a   : > { %s3323_s10 = scalar_lea.hbm %s4389_s6, 2048  ;;  %s3327_s13 = scalar_lea.hbm %s4444_s5, 4096 }
 0x54b   : > { %p3324_p8 = scmp.ne.s32.totalorder %s4389_s6, %s3323_s10  ;;  %p3328_p1 = scmp.lt.u32.totalorder %s4389_s6, %s4444_s5 }
 0x54c   : > { %p3329_p0 = scmp.lt.u32.totalorder %s3327_s13, %s3323_s10  ;;  %p3331_p6 = scmp.lt.u32.totalorder %s3323_s10, %s4389_s6 }
 0x54d   : > { %p3325_p11 = pnand %p3324_p8, %p4455_p9 }
 0x54e   : > { %p3330_p5 = por %p3329_p0, %p3328_p1 }
 0x54f   : > { %p3326_p13 = pneg %p3325_p11 }
 0x550   : > { %p3332_p10 = por %p3331_p6, %p3330_p5 }
 0x552   : > { %p3333_p12 = pnand %p3332_p10, %p3326_p13 }
 0x554   : > { %3336 = shalt.err (!%p3333_p12)
}
 0x555   : > { %s3390_s16 = smov 128   ;;  %s3391_s17 = smov 8  }
 0x556   : > { %3051 = dma.vmem_to_hbm [thread:$0]  (%p4455_p9), %s4391_s23, 2048, %s4389_s6, %s4398_s22, %s3390_s16, %s3390_s16, %s3391_s17  }
 0x557 PF: > { %p3063_p2 = scmp.ge.s32.totalorder %s3375_s21, 2  ;;  %s2131_s25 = sand.u32 1, %s3363_s18  }
 0x558   : > { %p4456_p3 = scmp.ne.s32.totalorder %s4449_s29, 0  ;;  %s2132_s26 = scalar_lea.sflag [#allocation4], %s2131_s25 }
 0x55a   : > { %p3058_p4 = pnand %p3063_p2, %p4456_p3 }
 0x55c   : > { %3358 = dma.done.wait (!%p3058_p4), %s2132_s26, 2048  }
 0x55d   : > { %3360 = vsyncadd (!%p3058_p4), %s2132_s26, 4294965248  ;;  %p16_p7 = scmp.ge.s32.totalorder %s3447_s24, 4   ;;  %s4457_s18 = smov %s3367_s19 }
 0x55e   : > { %s4458_s19 = smov %s3371_s20  ;;  %s4459_s20 = smov %s3458_s27 }
 0x55f   : > { %s4460_s21 = smov %s3447_s24  ;;  %18 = sbr.rel (!%p16_p7) target bundleno = 4 (0x4), region = 80 }
 0x566   :  { %2137 = vsyncpa [#allocation3], 1 }
 0x567   :  { %2139 = vsyncpa [#allocation3 + $0x1], 1 }
 0x568   :  { %2140 = vsyncpa [#allocation4], 1 }
 0x569   :  { %2142 = vsyncpa [#allocation4 + $0x1], 1 }

</bundles_post_ra>
